<compile_context>
chip_gen: v6e
topology: v6e:2x2x1
jax: 0.10.0
libtpu: 0.0.40
codegen_flags: <defaults>
</compile_context>

<pallas_src>
import math
from functools import partial

import jax
import jax.numpy as jnp
from jax.experimental import pallas as pl
from jax.experimental.pallas import tpu as pltpu

_INV_SQRT2 = 0.7071067811865476


def _gelu_exact(x):
    # torch nn.GELU default (exact erf form), computed in f32.
    return 0.5 * x * (1.0 + jax.lax.erf(x * _INV_SQRT2))


# ---------------------------------------------------------------------------
# Fused kernel: 3 MLPs (all layers) + multi-head attention for one batch
# ---------------------------------------------------------------------------
def _gatt_kernel(x_ref, wt_ref, b_ref, o_ref, *, num_layers, num_heads, head_dim):
    """grid = (B,).  x_ref: (1, N, E); wt_ref: (3L, E, E) bf16 resident slab;
    b_ref: (3L, 1, E) f32 resident; o_ref: (1, N, E)."""
    L, H, Dh = num_layers, num_heads, head_dim
    x = x_ref[0].astype(jnp.float32)                        # (N, E)

    # --- q / k / v MLPs, statically unrolled (resident bf16 weights) -------
    qkv = []
    for p in range(3):                                      # 0=q, 1=k, 2=v
        h = x
        for l in range(L):
            if l > 0:
                h = _gelu_exact(h)                          # f32 GELU (exact)
            h = (jnp.dot(h.astype(jnp.bfloat16), wt_ref[p * L + l],
                         preferred_element_type=jnp.float32)
                 + b_ref[p * L + l])                        # (N, E) f32
        qkv.append(h.astype(jnp.bfloat16))                  # bf16 MXU feed for attention
    q, k, v = qkv

    # --- per-head attention: softmax(q k^T) v, no 1/sqrt(d) scaling --------
    # Heads are contiguous Dh-wide column groups (same split as view+permute).
    for hh in range(H):
        c0, c1 = hh * Dh, (hh + 1) * Dh
        qh, kh, vh = q[:, c0:c1], k[:, c0:c1], v[:, c0:c1]  # in-VMEM slices
        s = jax.lax.dot_general(qh, kh, (((1,), (1,)), ((), ())),
                                preferred_element_type=jnp.float32)   # (N, N)
        s = s - jnp.max(s, axis=-1, keepdims=True)
        e = jnp.exp(s)
        pr = e * pl.reciprocal(jnp.sum(e, axis=-1, keepdims=True), approx=True)
        oh = jnp.dot(pr.astype(jnp.bfloat16), vh,
                     preferred_element_type=jnp.float32)              # (N, Dh)
        o_ref[0, :, c0:c1] = oh.astype(o_ref.dtype)


def qkv_attention_mlp_forward(x, wt_stack, b_stack, num_heads):
    """x: (B, N, E) f32; wt_stack: (3L, E, E) bf16 (rows = W.T, index p*L+l);
    b_stack: (3L, 1, E) f32.  Returns (B, N, E), matching QKVAttentionMLP."""
    B, N, E = x.shape
    three_l = wt_stack.shape[0]
    L = three_l // 3
    H = num_heads
    Dh = E // H

    kernel = partial(_gatt_kernel, num_layers=L, num_heads=H, head_dim=Dh)

    # VMEM budget: resident slabs + double-buffered in/out tiles + live
    # activations / score tile.  Clamp to 48 MiB (v7x has 64 MiB physical).
    needed = (wt_stack.size * 2 + b_stack.size * 4        # resident slabs
              + 4 * N * E * 4                             # x + out, double buffered
              + 4 * N * E * 4 + 3 * N * E * 2             # live h / q / k / v
              + N * N * 4 + N * Dh * 4)                   # score + per-head out
    vmem_limit = int(min(max(2 * needed, 32 << 20), 48 << 20))

    flops = 2 * 3 * L * B * N * E * E + 4 * B * N * N * E
    transcendentals = 3 * (L - 1) * B * N * E + B * H * N * N
    bytes_accessed = (x.size * 4 + wt_stack.size * 2 + b_stack.size * 4
                      + B * N * E * 4)

    return pl.pallas_call(
        kernel,
        out_shape=jax.ShapeDtypeStruct((B, N, E), x.dtype),
        grid_spec=pltpu.PrefetchScalarGridSpec(
            num_scalar_prefetch=0,
            grid=(B,),
            in_specs=[
                # one batch's sequence per grid step
                pl.BlockSpec((1, N, E), lambda b: (b, 0, 0)),
                # full weight / bias slabs, constant index -> DMA'd once, resident
                pl.BlockSpec((three_l, E, E), lambda b: (0, 0, 0)),
                pl.BlockSpec((three_l, 1, E), lambda b: (0, 0, 0)),
            ],
            out_specs=pl.BlockSpec((1, N, E), lambda b: (b, 0, 0)),
        ),
        compiler_params=pltpu.CompilerParams(
            dimension_semantics=("parallel",),
            vmem_limit_bytes=vmem_limit,
        ),
        cost_estimate=pl.CostEstimate(
            flops=flops, transcendentals=transcendentals,
            bytes_accessed=bytes_accessed),
    )(x, wt_stack, b_stack)


# ---------------------------------------------------------------------------
# Parameters: torch-style init, then one-time packing into the kernel layout
# ---------------------------------------------------------------------------
def init_qkv_mlp_params(key, dim, num_layers):
    """nn.Linear default init (uniform +/- 1/sqrt(dim)); weights stored (out, in)."""
    bound = 1.0 / math.sqrt(dim)
    params = {"q": [], "k": [], "v": []}
    for name in ("q", "k", "v"):
        for _ in range(num_layers):
            key, kw, kb = jax.random.split(key, 3)
            w = jax.random.uniform(kw, (dim, dim), jnp.float32, -bound, bound)
            b = jax.random.uniform(kb, (dim,), jnp.float32, -bound, bound)
            params[name].append((w, b))
    return params


def pack_params(params, dim, num_layers):
    """One-time layout prep (NOT per forward): transpose to (in, out), cast
    weights to bf16, stack as (3L, E, E); biases kept f32 as (3L, 1, E).
    Row index = p * num_layers + l  with p in (q, k, v)."""
    wt = jnp.stack([params[name][l][0].T
                    for name in ("q", "k", "v")
                    for l in range(num_layers)]).astype(jnp.bfloat16)
    b = jnp.stack([params[name][l][1].reshape(1, dim)
                   for name in ("q", "k", "v")
                   for l in range(num_layers)]).astype(jnp.float32)
    return wt, b


# ---------------------------------------------------------------------------
# Pure-JAX references for validation
# ---------------------------------------------------------------------------
def reference_forward(x, wt_stack, b_stack, num_heads, *, matched_bf16=True):
    """matched_bf16=True reproduces the kernel's bf16 MXU feeds; False keeps
    all matmul inputs in f32 (torch-like, up to bf16 weight quantization)."""
    B, N, E = x.shape
    H = num_heads
    Dh = E // H
    L = wt_stack.shape[0] // 3
    outs = []
    for p in range(3):
        h = x.reshape(B * N, E).astype(jnp.float32)
        for l in range(L):
            if l > 0:
                h = _gelu_exact(h)
            wt = wt_stack[p * L + l]
            if matched_bf16:
                h = jnp.dot(h.astype(jnp.bfloat16), wt,
                            preferred_element_type=jnp.float32) + b_stack[p * L + l]
            else:
                h = jnp.dot(h, wt.astype(jnp.float32)) + b_stack[p * L + l]
        outs.append(h)
    if matched_bf16:
        outs = [o.astype(jnp.bfloat16).astype(jnp.float32) for o in outs]
    q, k, v = [o.reshape(B, N, H, Dh).transpose(0, 2, 1, 3) for o in outs]
    att = jnp.einsum("bhnd,bhmd->bhnm", q, k)
    att = jax.nn.softmax(att, axis=-1)
    out = jnp.einsum("bhnm,bhmd->bhnd", att, v)
    return out.transpose(0, 2, 1, 3).reshape(B, N, E)


if __name__ == "__main__":
    embed_dim = 128
    num_heads = 4
    num_layers = 3
    batch, seq = 2, 8

    key = jax.random.PRNGKey(0)
    key, kx = jax.random.split(key)
    x = jax.random.normal(kx, (batch, seq, embed_dim), jnp.float32)

    params = init_qkv_mlp_params(key, embed_dim, num_layers)
    wt_stack, b_stack = pack_params(params, embed_dim, num_layers)

    fwd = jax.jit(partial(qkv_attention_mlp_forward, num_heads=num_heads))
    out = jax.block_until_ready(fwd(x, wt_stack, b_stack))

    ref_matched = reference_forward(x, wt_stack, b_stack, num_heads, matched_bf16=True)
    ref_f32 = reference_forward(x, wt_stack, b_stack, num_heads, matched_bf16=False)

    assert out.shape == (batch, seq, embed_dim)
    err_m = float(jnp.max(jnp.abs(out - ref_matched)))
    err_f = float(jnp.max(jnp.abs(out - ref_f32)))
    assert err_m < 2e-2, ("mismatch vs matched-precision reference", err_m)
    assert err_f < 7e-2, ("mismatch vs f32 reference", err_f)
    print("KERNEL_OK")
</pallas_src>

<mosaic_0001>
module attributes {stable_mosaic.version = 11 : i64} {
  func.func @_gatt_kernel(%arg0: i32, %arg1: memref<1x8x128xf32, #tpu.memory_space<vmem>>, %arg2: memref<9x128x128xbf16, #tpu.memory_space<vmem>>, %arg3: memref<9x1x128xf32, #tpu.memory_space<vmem>>, %arg4: memref<1x8x128xf32, #tpu.memory_space<vmem>>) attributes {dimension_semantics = [#tpu.dimension_semantics<parallel>], iteration_bounds = array<i64: 2>, scalar_prefetch = 0 : i64, scratch_operands = 0 : i64, tpu.core_type = #tpu.core_type<tc>, window_params = [{transform_indices = @transform_0, window_bounds = array<i64: 1, 8, 128>}, {pipeline_mode = #tpu.pipeline_mode<synchronous>, transform_indices = @transform_1, window_bounds = array<i64: 9, 128, 128>}, {pipeline_mode = #tpu.pipeline_mode<synchronous>, transform_indices = @transform_2, window_bounds = array<i64: 9, 1, 128>}, {transform_indices = @transform_3, window_bounds = array<i64: 1, 8, 128>}]} {
    %c0 = arith.constant 0 : index
    %c0_0 = arith.constant 0 : index
    %c0_1 = arith.constant 0 : index
    %0 = vector.load %arg1[%c0, %c0_0, %c0_1] : memref<1x8x128xf32, #tpu.memory_space<vmem>>, vector<1x8x128xf32>
    %1 = vector.shape_cast %0 : vector<1x8x128xf32> to vector<8x128xf32>
    %2 = arith.truncf %1 : vector<8x128xf32> to vector<8x128xbf16>
    %c0_2 = arith.constant 0 : index
    %c0_3 = arith.constant 0 : index
    %c0_4 = arith.constant 0 : index
    %3 = vector.load %arg2[%c0_2, %c0_3, %c0_4] : memref<9x128x128xbf16, #tpu.memory_space<vmem>>, vector<1x128x128xbf16>
    %4 = vector.shape_cast %3 : vector<1x128x128xbf16> to vector<128x128xbf16>
    %cst = arith.constant dense<0.000000e+00> : vector<8x128xf32>
    %5 = tpu.matmul %2, %4, %cst {dimension_numbers = #tpu.dot_dimension_numbers<[1], [0], [0], [1], [0, 0, 1, 1], [], []>} : vector<8x128xbf16>, vector<128x128xbf16>, vector<8x128xf32> -> vector<8x128xf32>
    %c0_5 = arith.constant 0 : index
    %c0_6 = arith.constant 0 : index
    %c0_7 = arith.constant 0 : index
    %6 = vector.load %arg3[%c0_5, %c0_6, %c0_7] : memref<9x1x128xf32, #tpu.memory_space<vmem>>, vector<1x1x128xf32>
    %7 = vector.shape_cast %6 : vector<1x1x128xf32> to vector<1x128xf32>
    %8 = vector.broadcast %7 : vector<1x128xf32> to vector<8x128xf32>
    %9 = arith.addf %5, %8 : vector<8x128xf32>
    %cst_8 = arith.constant 5.000000e-01 : f32
    %10 = vector.broadcast %cst_8 : f32 to vector<8x128xf32>
    %11 = arith.mulf %10, %9 : vector<8x128xf32>
    %cst_9 = arith.constant 0.707106769 : f32
    %12 = vector.broadcast %cst_9 : f32 to vector<8x128xf32>
    %13 = arith.mulf %9, %12 : vector<8x128xf32>
    %14 = math.erf %13 : vector<8x128xf32>
    %cst_10 = arith.constant 1.000000e+00 : f32
    %15 = vector.broadcast %cst_10 : f32 to vector<8x128xf32>
    %16 = arith.addf %15, %14 : vector<8x128xf32>
    %17 = arith.mulf %11, %16 : vector<8x128xf32>
    %18 = arith.truncf %17 : vector<8x128xf32> to vector<8x128xbf16>
    %c1 = arith.constant 1 : index
    %c0_11 = arith.constant 0 : index
    %c0_12 = arith.constant 0 : index
    %19 = vector.load %arg2[%c1, %c0_11, %c0_12] : memref<9x128x128xbf16, #tpu.memory_space<vmem>>, vector<1x128x128xbf16>
    %20 = vector.shape_cast %19 : vector<1x128x128xbf16> to vector<128x128xbf16>
    %cst_13 = arith.constant dense<0.000000e+00> : vector<8x128xf32>
    %21 = tpu.matmul %18, %20, %cst_13 {dimension_numbers = #tpu.dot_dimension_numbers<[1], [0], [0], [1], [0, 0, 1, 1], [], []>} : vector<8x128xbf16>, vector<128x128xbf16>, vector<8x128xf32> -> vector<8x128xf32>
    %c1_14 = arith.constant 1 : index
    %c0_15 = arith.constant 0 : index
    %c0_16 = arith.constant 0 : index
    %22 = vector.load %arg3[%c1_14, %c0_15, %c0_16] : memref<9x1x128xf32, #tpu.memory_space<vmem>>, vector<1x1x128xf32>
    %23 = vector.shape_cast %22 : vector<1x1x128xf32> to vector<1x128xf32>
    %24 = vector.broadcast %23 : vector<1x128xf32> to vector<8x128xf32>
    %25 = arith.addf %21, %24 : vector<8x128xf32>
    %cst_17 = arith.constant 5.000000e-01 : f32
    %26 = vector.broadcast %cst_17 : f32 to vector<8x128xf32>
    %27 = arith.mulf %26, %25 : vector<8x128xf32>
    %cst_18 = arith.constant 0.707106769 : f32
    %28 = vector.broadcast %cst_18 : f32 to vector<8x128xf32>
    %29 = arith.mulf %25, %28 : vector<8x128xf32>
    %30 = math.erf %29 : vector<8x128xf32>
    %cst_19 = arith.constant 1.000000e+00 : f32
    %31 = vector.broadcast %cst_19 : f32 to vector<8x128xf32>
    %32 = arith.addf %31, %30 : vector<8x128xf32>
    %33 = arith.mulf %27, %32 : vector<8x128xf32>
    %34 = arith.truncf %33 : vector<8x128xf32> to vector<8x128xbf16>
    %c2 = arith.constant 2 : index
    %c0_20 = arith.constant 0 : index
    %c0_21 = arith.constant 0 : index
    %35 = vector.load %arg2[%c2, %c0_20, %c0_21] : memref<9x128x128xbf16, #tpu.memory_space<vmem>>, vector<1x128x128xbf16>
    %36 = vector.shape_cast %35 : vector<1x128x128xbf16> to vector<128x128xbf16>
    %cst_22 = arith.constant dense<0.000000e+00> : vector<8x128xf32>
    %37 = tpu.matmul %34, %36, %cst_22 {dimension_numbers = #tpu.dot_dimension_numbers<[1], [0], [0], [1], [0, 0, 1, 1], [], []>} : vector<8x128xbf16>, vector<128x128xbf16>, vector<8x128xf32> -> vector<8x128xf32>
    %c2_23 = arith.constant 2 : index
    %c0_24 = arith.constant 0 : index
    %c0_25 = arith.constant 0 : index
    %38 = vector.load %arg3[%c2_23, %c0_24, %c0_25] : memref<9x1x128xf32, #tpu.memory_space<vmem>>, vector<1x1x128xf32>
    %39 = vector.shape_cast %38 : vector<1x1x128xf32> to vector<1x128xf32>
    %40 = vector.broadcast %39 : vector<1x128xf32> to vector<8x128xf32>
    %41 = arith.addf %37, %40 : vector<8x128xf32>
    %42 = arith.truncf %41 : vector<8x128xf32> to vector<8x128xbf16>
    %43 = arith.truncf %1 : vector<8x128xf32> to vector<8x128xbf16>
    %c3 = arith.constant 3 : index
    %c0_26 = arith.constant 0 : index
    %c0_27 = arith.constant 0 : index
    %44 = vector.load %arg2[%c3, %c0_26, %c0_27] : memref<9x128x128xbf16, #tpu.memory_space<vmem>>, vector<1x128x128xbf16>
    %45 = vector.shape_cast %44 : vector<1x128x128xbf16> to vector<128x128xbf16>
    %cst_28 = arith.constant dense<0.000000e+00> : vector<8x128xf32>
    %46 = tpu.matmul %43, %45, %cst_28 {dimension_numbers = #tpu.dot_dimension_numbers<[1], [0], [0], [1], [0, 0, 1, 1], [], []>} : vector<8x128xbf16>, vector<128x128xbf16>, vector<8x128xf32> -> vector<8x128xf32>
    %c3_29 = arith.constant 3 : index
    %c0_30 = arith.constant 0 : index
    %c0_31 = arith.constant 0 : index
    %47 = vector.load %arg3[%c3_29, %c0_30, %c0_31] : memref<9x1x128xf32, #tpu.memory_space<vmem>>, vector<1x1x128xf32>
    %48 = vector.shape_cast %47 : vector<1x1x128xf32> to vector<1x128xf32>
    %49 = vector.broadcast %48 : vector<1x128xf32> to vector<8x128xf32>
    %50 = arith.addf %46, %49 : vector<8x128xf32>
    %cst_32 = arith.constant 5.000000e-01 : f32
    %51 = vector.broadcast %cst_32 : f32 to vector<8x128xf32>
    %52 = arith.mulf %51, %50 : vector<8x128xf32>
    %cst_33 = arith.constant 0.707106769 : f32
    %53 = vector.broadcast %cst_33 : f32 to vector<8x128xf32>
    %54 = arith.mulf %50, %53 : vector<8x128xf32>
    %55 = math.erf %54 : vector<8x128xf32>
    %cst_34 = arith.constant 1.000000e+00 : f32
    %56 = vector.broadcast %cst_34 : f32 to vector<8x128xf32>
    %57 = arith.addf %56, %55 : vector<8x128xf32>
    %58 = arith.mulf %52, %57 : vector<8x128xf32>
    %59 = arith.truncf %58 : vector<8x128xf32> to vector<8x128xbf16>
    %c4 = arith.constant 4 : index
    %c0_35 = arith.constant 0 : index
    %c0_36 = arith.constant 0 : index
    %60 = vector.load %arg2[%c4, %c0_35, %c0_36] : memref<9x128x128xbf16, #tpu.memory_space<vmem>>, vector<1x128x128xbf16>
    %61 = vector.shape_cast %60 : vector<1x128x128xbf16> to vector<128x128xbf16>
    %cst_37 = arith.constant dense<0.000000e+00> : vector<8x128xf32>
    %62 = tpu.matmul %59, %61, %cst_37 {dimension_numbers = #tpu.dot_dimension_numbers<[1], [0], [0], [1], [0, 0, 1, 1], [], []>} : vector<8x128xbf16>, vector<128x128xbf16>, vector<8x128xf32> -> vector<8x128xf32>
    %c4_38 = arith.constant 4 : index
    %c0_39 = arith.constant 0 : index
    %c0_40 = arith.constant 0 : index
    %63 = vector.load %arg3[%c4_38, %c0_39, %c0_40] : memref<9x1x128xf32, #tpu.memory_space<vmem>>, vector<1x1x128xf32>
    %64 = vector.shape_cast %63 : vector<1x1x128xf32> to vector<1x128xf32>
    %65 = vector.broadcast %64 : vector<1x128xf32> to vector<8x128xf32>
    %66 = arith.addf %62, %65 : vector<8x128xf32>
    %cst_41 = arith.constant 5.000000e-01 : f32
    %67 = vector.broadcast %cst_41 : f32 to vector<8x128xf32>
    %68 = arith.mulf %67, %66 : vector<8x128xf32>
    %cst_42 = arith.constant 0.707106769 : f32
    %69 = vector.broadcast %cst_42 : f32 to vector<8x128xf32>
    %70 = arith.mulf %66, %69 : vector<8x128xf32>
    %71 = math.erf %70 : vector<8x128xf32>
    %cst_43 = arith.constant 1.000000e+00 : f32
    %72 = vector.broadcast %cst_43 : f32 to vector<8x128xf32>
    %73 = arith.addf %72, %71 : vector<8x128xf32>
    %74 = arith.mulf %68, %73 : vector<8x128xf32>
    %75 = arith.truncf %74 : vector<8x128xf32> to vector<8x128xbf16>
    %c5 = arith.constant 5 : index
    %c0_44 = arith.constant 0 : index
    %c0_45 = arith.constant 0 : index
    %76 = vector.load %arg2[%c5, %c0_44, %c0_45] : memref<9x128x128xbf16, #tpu.memory_space<vmem>>, vector<1x128x128xbf16>
    %77 = vector.shape_cast %76 : vector<1x128x128xbf16> to vector<128x128xbf16>
    %cst_46 = arith.constant dense<0.000000e+00> : vector<8x128xf32>
    %78 = tpu.matmul %75, %77, %cst_46 {dimension_numbers = #tpu.dot_dimension_numbers<[1], [0], [0], [1], [0, 0, 1, 1], [], []>} : vector<8x128xbf16>, vector<128x128xbf16>, vector<8x128xf32> -> vector<8x128xf32>
    %c5_47 = arith.constant 5 : index
    %c0_48 = arith.constant 0 : index
    %c0_49 = arith.constant 0 : index
    %79 = vector.load %arg3[%c5_47, %c0_48, %c0_49] : memref<9x1x128xf32, #tpu.memory_space<vmem>>, vector<1x1x128xf32>
    %80 = vector.shape_cast %79 : vector<1x1x128xf32> to vector<1x128xf32>
    %81 = vector.broadcast %80 : vector<1x128xf32> to vector<8x128xf32>
    %82 = arith.addf %78, %81 : vector<8x128xf32>
    %83 = arith.truncf %82 : vector<8x128xf32> to vector<8x128xbf16>
    %84 = arith.truncf %1 : vector<8x128xf32> to vector<8x128xbf16>
    %c6 = arith.constant 6 : index
    %c0_50 = arith.constant 0 : index
    %c0_51 = arith.constant 0 : index
    %85 = vector.load %arg2[%c6, %c0_50, %c0_51] : memref<9x128x128xbf16, #tpu.memory_space<vmem>>, vector<1x128x128xbf16>
    %86 = vector.shape_cast %85 : vector<1x128x128xbf16> to vector<128x128xbf16>
    %cst_52 = arith.constant dense<0.000000e+00> : vector<8x128xf32>
    %87 = tpu.matmul %84, %86, %cst_52 {dimension_numbers = #tpu.dot_dimension_numbers<[1], [0], [0], [1], [0, 0, 1, 1], [], []>} : vector<8x128xbf16>, vector<128x128xbf16>, vector<8x128xf32> -> vector<8x128xf32>
    %c6_53 = arith.constant 6 : index
    %c0_54 = arith.constant 0 : index
    %c0_55 = arith.constant 0 : index
    %88 = vector.load %arg3[%c6_53, %c0_54, %c0_55] : memref<9x1x128xf32, #tpu.memory_space<vmem>>, vector<1x1x128xf32>
    %89 = vector.shape_cast %88 : vector<1x1x128xf32> to vector<1x128xf32>
    %90 = vector.broadcast %89 : vector<1x128xf32> to vector<8x128xf32>
    %91 = arith.addf %87, %90 : vector<8x128xf32>
    %cst_56 = arith.constant 5.000000e-01 : f32
    %92 = vector.broadcast %cst_56 : f32 to vector<8x128xf32>
    %93 = arith.mulf %92, %91 : vector<8x128xf32>
    %cst_57 = arith.constant 0.707106769 : f32
    %94 = vector.broadcast %cst_57 : f32 to vector<8x128xf32>
    %95 = arith.mulf %91, %94 : vector<8x128xf32>
    %96 = math.erf %95 : vector<8x128xf32>
    %cst_58 = arith.constant 1.000000e+00 : f32
    %97 = vector.broadcast %cst_58 : f32 to vector<8x128xf32>
    %98 = arith.addf %97, %96 : vector<8x128xf32>
    %99 = arith.mulf %93, %98 : vector<8x128xf32>
    %100 = arith.truncf %99 : vector<8x128xf32> to vector<8x128xbf16>
    %c7 = arith.constant 7 : index
    %c0_59 = arith.constant 0 : index
    %c0_60 = arith.constant 0 : index
    %101 = vector.load %arg2[%c7, %c0_59, %c0_60] : memref<9x128x128xbf16, #tpu.memory_space<vmem>>, vector<1x128x128xbf16>
    %102 = vector.shape_cast %101 : vector<1x128x128xbf16> to vector<128x128xbf16>
    %cst_61 = arith.constant dense<0.000000e+00> : vector<8x128xf32>
    %103 = tpu.matmul %100, %102, %cst_61 {dimension_numbers = #tpu.dot_dimension_numbers<[1], [0], [0], [1], [0, 0, 1, 1], [], []>} : vector<8x128xbf16>, vector<128x128xbf16>, vector<8x128xf32> -> vector<8x128xf32>
    %c7_62 = arith.constant 7 : index
    %c0_63 = arith.constant 0 : index
    %c0_64 = arith.constant 0 : index
    %104 = vector.load %arg3[%c7_62, %c0_63, %c0_64] : memref<9x1x128xf32, #tpu.memory_space<vmem>>, vector<1x1x128xf32>
    %105 = vector.shape_cast %104 : vector<1x1x128xf32> to vector<1x128xf32>
    %106 = vector.broadcast %105 : vector<1x128xf32> to vector<8x128xf32>
    %107 = arith.addf %103, %106 : vector<8x128xf32>
    %cst_65 = arith.constant 5.000000e-01 : f32
    %108 = vector.broadcast %cst_65 : f32 to vector<8x128xf32>
    %109 = arith.mulf %108, %107 : vector<8x128xf32>
    %cst_66 = arith.constant 0.707106769 : f32
    %110 = vector.broadcast %cst_66 : f32 to vector<8x128xf32>
    %111 = arith.mulf %107, %110 : vector<8x128xf32>
    %112 = math.erf %111 : vector<8x128xf32>
    %cst_67 = arith.constant 1.000000e+00 : f32
    %113 = vector.broadcast %cst_67 : f32 to vector<8x128xf32>
    %114 = arith.addf %113, %112 : vector<8x128xf32>
    %115 = arith.mulf %109, %114 : vector<8x128xf32>
    %116 = arith.truncf %115 : vector<8x128xf32> to vector<8x128xbf16>
    %c8 = arith.constant 8 : index
    %c0_68 = arith.constant 0 : index
    %c0_69 = arith.constant 0 : index
    %117 = vector.load %arg2[%c8, %c0_68, %c0_69] : memref<9x128x128xbf16, #tpu.memory_space<vmem>>, vector<1x128x128xbf16>
    %118 = vector.shape_cast %117 : vector<1x128x128xbf16> to vector<128x128xbf16>
    %cst_70 = arith.constant dense<0.000000e+00> : vector<8x128xf32>
    %119 = tpu.matmul %116, %118, %cst_70 {dimension_numbers = #tpu.dot_dimension_numbers<[1], [0], [0], [1], [0, 0, 1, 1], [], []>} : vector<8x128xbf16>, vector<128x128xbf16>, vector<8x128xf32> -> vector<8x128xf32>
    %c8_71 = arith.constant 8 : index
    %c0_72 = arith.constant 0 : index
    %c0_73 = arith.constant 0 : index
    %120 = vector.load %arg3[%c8_71, %c0_72, %c0_73] : memref<9x1x128xf32, #tpu.memory_space<vmem>>, vector<1x1x128xf32>
    %121 = vector.shape_cast %120 : vector<1x1x128xf32> to vector<1x128xf32>
    %122 = vector.broadcast %121 : vector<1x128xf32> to vector<8x128xf32>
    %123 = arith.addf %119, %122 : vector<8x128xf32>
    %124 = arith.truncf %123 : vector<8x128xf32> to vector<8x128xbf16>
    %125 = vector.extract_strided_slice %42 {offsets = [0, 0], sizes = [8, 32], strides = [1, 1]} : vector<8x128xbf16> to vector<8x32xbf16>
    %126 = vector.extract_strided_slice %83 {offsets = [0, 0], sizes = [8, 32], strides = [1, 1]} : vector<8x128xbf16> to vector<8x32xbf16>
    %127 = vector.extract_strided_slice %124 {offsets = [0, 0], sizes = [8, 32], strides = [1, 1]} : vector<8x128xbf16> to vector<8x32xbf16>
    %cst_74 = arith.constant dense<0.000000e+00> : vector<8x8xf32>
    %128 = tpu.matmul %125, %126, %cst_74 {dimension_numbers = #tpu.dot_dimension_numbers<[1], [1], [0], [0], [0, 0, 1, 0], [], []>} : vector<8x32xbf16>, vector<8x32xbf16>, vector<8x8xf32> -> vector<8x8xf32>
    %cst_75 = arith.constant dense<0xFF800000> : vector<8xf32>
    %129 = vector.multi_reduction <maximumf>, %128, %cst_75 [1] : vector<8x8xf32> to vector<8xf32>
    %130 = vector.shape_cast %129 : vector<8xf32> to vector<8x1xf32>
    %131 = vector.broadcast %130 : vector<8x1xf32> to vector<8x8xf32>
    %132 = arith.subf %128, %131 : vector<8x8xf32>
    %133 = math.exp %132 : vector<8x8xf32>
    %cst_76 = arith.constant dense<0.000000e+00> : vector<8xf32>
    %134 = vector.multi_reduction <add>, %133, %cst_76 [1] : vector<8x8xf32> to vector<8xf32>
    %135 = vector.shape_cast %134 : vector<8xf32> to vector<8x1xf32>
    %136 = tpu.reciprocal %135 {approx = true} : vector<8x1xf32> -> vector<8x1xf32>
    %137 = vector.broadcast %136 : vector<8x1xf32> to vector<8x8xf32>
    %138 = arith.mulf %133, %137 : vector<8x8xf32>
    %139 = arith.truncf %138 : vector<8x8xf32> to vector<8x8xbf16>
    %cst_77 = arith.constant dense<0.000000e+00> : vector<8x32xf32>
    %140 = tpu.matmul %139, %127, %cst_77 {dimension_numbers = #tpu.dot_dimension_numbers<[1], [0], [0], [1], [0, 0, 1, 1], [], []>} : vector<8x8xbf16>, vector<8x32xbf16>, vector<8x32xf32> -> vector<8x32xf32>
    %c0_78 = arith.constant 0 : index
    %c0_79 = arith.constant 0 : index
    %c0_80 = arith.constant 0 : index
    %141 = vector.load %arg4[%c0_78, %c0_79, %c0_80] : memref<1x8x128xf32, #tpu.memory_space<vmem>>, vector<1x8x32xf32>
    %142 = vector.shape_cast %141 : vector<1x8x32xf32> to vector<8x32xf32>
    %143 = vector.shape_cast %140 : vector<8x32xf32> to vector<1x8x32xf32>
    tpu.vector_store %arg4[%c0_78, %c0_79, %c0_80], %143 {strides = array<i32>} : memref<1x8x128xf32, #tpu.memory_space<vmem>>, vector<1x8x32xf32>,
    %144 = vector.extract_strided_slice %42 {offsets = [0, 32], sizes = [8, 32], strides = [1, 1]} : vector<8x128xbf16> to vector<8x32xbf16>
    %145 = vector.extract_strided_slice %83 {offsets = [0, 32], sizes = [8, 32], strides = [1, 1]} : vector<8x128xbf16> to vector<8x32xbf16>
    %146 = vector.extract_strided_slice %124 {offsets = [0, 32], sizes = [8, 32], strides = [1, 1]} : vector<8x128xbf16> to vector<8x32xbf16>
    %cst_81 = arith.constant dense<0.000000e+00> : vector<8x8xf32>
    %147 = tpu.matmul %144, %145, %cst_81 {dimension_numbers = #tpu.dot_dimension_numbers<[1], [1], [0], [0], [0, 0, 1, 0], [], []>} : vector<8x32xbf16>, vector<8x32xbf16>, vector<8x8xf32> -> vector<8x8xf32>
    %cst_82 = arith.constant dense<0xFF800000> : vector<8xf32>
    %148 = vector.multi_reduction <maximumf>, %147, %cst_82 [1] : vector<8x8xf32> to vector<8xf32>
    %149 = vector.shape_cast %148 : vector<8xf32> to vector<8x1xf32>
    %150 = vector.broadcast %149 : vector<8x1xf32> to vector<8x8xf32>
    %151 = arith.subf %147, %150 : vector<8x8xf32>
    %152 = math.exp %151 : vector<8x8xf32>
    %cst_83 = arith.constant dense<0.000000e+00> : vector<8xf32>
    %153 = vector.multi_reduction <add>, %152, %cst_83 [1] : vector<8x8xf32> to vector<8xf32>
    %154 = vector.shape_cast %153 : vector<8xf32> to vector<8x1xf32>
    %155 = tpu.reciprocal %154 {approx = true} : vector<8x1xf32> -> vector<8x1xf32>
    %156 = vector.broadcast %155 : vector<8x1xf32> to vector<8x8xf32>
    %157 = arith.mulf %152, %156 : vector<8x8xf32>
    %158 = arith.truncf %157 : vector<8x8xf32> to vector<8x8xbf16>
    %cst_84 = arith.constant dense<0.000000e+00> : vector<8x32xf32>
    %159 = tpu.matmul %158, %146, %cst_84 {dimension_numbers = #tpu.dot_dimension_numbers<[1], [0], [0], [1], [0, 0, 1, 1], [], []>} : vector<8x8xbf16>, vector<8x32xbf16>, vector<8x32xf32> -> vector<8x32xf32>
    %c0_85 = arith.constant 0 : index
    %c0_86 = arith.constant 0 : index
    %c32 = arith.constant 32 : index
    %160 = vector.load %arg4[%c0_85, %c0_86, %c32] : memref<1x8x128xf32, #tpu.memory_space<vmem>>, vector<1x8x32xf32>
    %161 = vector.shape_cast %160 : vector<1x8x32xf32> to vector<8x32xf32>
    %162 = vector.shape_cast %159 : vector<8x32xf32> to vector<1x8x32xf32>
    tpu.vector_store %arg4[%c0_85, %c0_86, %c32], %162 {strides = array<i32>} : memref<1x8x128xf32, #tpu.memory_space<vmem>>, vector<1x8x32xf32>,
    %163 = vector.extract_strided_slice %42 {offsets = [0, 64], sizes = [8, 32], strides = [1, 1]} : vector<8x128xbf16> to vector<8x32xbf16>
    %164 = vector.extract_strided_slice %83 {offsets = [0, 64], sizes = [8, 32], strides = [1, 1]} : vector<8x128xbf16> to vector<8x32xbf16>
    %165 = vector.extract_strided_slice %124 {offsets = [0, 64], sizes = [8, 32], strides = [1, 1]} : vector<8x128xbf16> to vector<8x32xbf16>
    %cst_87 = arith.constant dense<0.000000e+00> : vector<8x8xf32>
    %166 = tpu.matmul %163, %164, %cst_87 {dimension_numbers = #tpu.dot_dimension_numbers<[1], [1], [0], [0], [0, 0, 1, 0], [], []>} : vector<8x32xbf16>, vector<8x32xbf16>, vector<8x8xf32> -> vector<8x8xf32>
    %cst_88 = arith.constant dense<0xFF800000> : vector<8xf32>
    %167 = vector.multi_reduction <maximumf>, %166, %cst_88 [1] : vector<8x8xf32> to vector<8xf32>
    %168 = vector.shape_cast %167 : vector<8xf32> to vector<8x1xf32>
    %169 = vector.broadcast %168 : vector<8x1xf32> to vector<8x8xf32>
    %170 = arith.subf %166, %169 : vector<8x8xf32>
    %171 = math.exp %170 : vector<8x8xf32>
    %cst_89 = arith.constant dense<0.000000e+00> : vector<8xf32>
    %172 = vector.multi_reduction <add>, %171, %cst_89 [1] : vector<8x8xf32> to vector<8xf32>
    %173 = vector.shape_cast %172 : vector<8xf32> to vector<8x1xf32>
    %174 = tpu.reciprocal %173 {approx = true} : vector<8x1xf32> -> vector<8x1xf32>
    %175 = vector.broadcast %174 : vector<8x1xf32> to vector<8x8xf32>
    %176 = arith.mulf %171, %175 : vector<8x8xf32>
    %177 = arith.truncf %176 : vector<8x8xf32> to vector<8x8xbf16>
    %cst_90 = arith.constant dense<0.000000e+00> : vector<8x32xf32>
    %178 = tpu.matmul %177, %165, %cst_90 {dimension_numbers = #tpu.dot_dimension_numbers<[1], [0], [0], [1], [0, 0, 1, 1], [], []>} : vector<8x8xbf16>, vector<8x32xbf16>, vector<8x32xf32> -> vector<8x32xf32>
    %c0_91 = arith.constant 0 : index
    %c0_92 = arith.constant 0 : index
    %c64 = arith.constant 64 : index
    %179 = vector.load %arg4[%c0_91, %c0_92, %c64] : memref<1x8x128xf32, #tpu.memory_space<vmem>>, vector<1x8x32xf32>
    %180 = vector.shape_cast %179 : vector<1x8x32xf32> to vector<8x32xf32>
    %181 = vector.shape_cast %178 : vector<8x32xf32> to vector<1x8x32xf32>
    tpu.vector_store %arg4[%c0_91, %c0_92, %c64], %181 {strides = array<i32>} : memref<1x8x128xf32, #tpu.memory_space<vmem>>, vector<1x8x32xf32>,
    %182 = vector.extract_strided_slice %42 {offsets = [0, 96], sizes = [8, 32], strides = [1, 1]} : vector<8x128xbf16> to vector<8x32xbf16>
    %183 = vector.extract_strided_slice %83 {offsets = [0, 96], sizes = [8, 32], strides = [1, 1]} : vector<8x128xbf16> to vector<8x32xbf16>
    %184 = vector.extract_strided_slice %124 {offsets = [0, 96], sizes = [8, 32], strides = [1, 1]} : vector<8x128xbf16> to vector<8x32xbf16>
    %cst_93 = arith.constant dense<0.000000e+00> : vector<8x8xf32>
    %185 = tpu.matmul %182, %183, %cst_93 {dimension_numbers = #tpu.dot_dimension_numbers<[1], [1], [0], [0], [0, 0, 1, 0], [], []>} : vector<8x32xbf16>, vector<8x32xbf16>, vector<8x8xf32> -> vector<8x8xf32>
    %cst_94 = arith.constant dense<0xFF800000> : vector<8xf32>
    %186 = vector.multi_reduction <maximumf>, %185, %cst_94 [1] : vector<8x8xf32> to vector<8xf32>
    %187 = vector.shape_cast %186 : vector<8xf32> to vector<8x1xf32>
    %188 = vector.broadcast %187 : vector<8x1xf32> to vector<8x8xf32>
    %189 = arith.subf %185, %188 : vector<8x8xf32>
    %190 = math.exp %189 : vector<8x8xf32>
    %cst_95 = arith.constant dense<0.000000e+00> : vector<8xf32>
    %191 = vector.multi_reduction <add>, %190, %cst_95 [1] : vector<8x8xf32> to vector<8xf32>
    %192 = vector.shape_cast %191 : vector<8xf32> to vector<8x1xf32>
    %193 = tpu.reciprocal %192 {approx = true} : vector<8x1xf32> -> vector<8x1xf32>
    %194 = vector.broadcast %193 : vector<8x1xf32> to vector<8x8xf32>
    %195 = arith.mulf %190, %194 : vector<8x8xf32>
    %196 = arith.truncf %195 : vector<8x8xf32> to vector<8x8xbf16>
    %cst_96 = arith.constant dense<0.000000e+00> : vector<8x32xf32>
    %197 = tpu.matmul %196, %184, %cst_96 {dimension_numbers = #tpu.dot_dimension_numbers<[1], [0], [0], [1], [0, 0, 1, 1], [], []>} : vector<8x8xbf16>, vector<8x32xbf16>, vector<8x32xf32> -> vector<8x32xf32>
    %c0_97 = arith.constant 0 : index
    %c0_98 = arith.constant 0 : index
    %c96 = arith.constant 96 : index
    %198 = vector.load %arg4[%c0_97, %c0_98, %c96] : memref<1x8x128xf32, #tpu.memory_space<vmem>>, vector<1x8x32xf32>
    %199 = vector.shape_cast %198 : vector<1x8x32xf32> to vector<8x32xf32>
    %200 = vector.shape_cast %197 : vector<8x32xf32> to vector<1x8x32xf32>
    tpu.vector_store %arg4[%c0_97, %c0_98, %c96], %200 {strides = array<i32>} : memref<1x8x128xf32, #tpu.memory_space<vmem>>, vector<1x8x32xf32>,
    return
  }
  func.func @transform_0(%arg0: i32) -> (i32, i32, i32) {
    %c0_i32 = arith.constant 0 : i32
    %c0_i32_0 = arith.constant 0 : i32
    %c0_i32_1 = arith.constant 0 : i32
    return %arg0, %c0_i32, %c0_i32_0 : i32, i32, i32
  }
  func.func @transform_1(%arg0: i32) -> (i32, i32, i32) {
    %c0_i32 = arith.constant 0 : i32
    %c0_i32_0 = arith.constant 0 : i32
    %c0_i32_1 = arith.constant 0 : i32
    %c0_i32_2 = arith.constant 0 : i32
    return %c0_i32, %c0_i32_0, %c0_i32_1 : i32, i32, i32
  }
  func.func @transform_2(%arg0: i32) -> (i32, i32, i32) {
    %c0_i32 = arith.constant 0 : i32
    %c0_i32_0 = arith.constant 0 : i32
    %c0_i32_1 = arith.constant 0 : i32
    %c0_i32_2 = arith.constant 0 : i32
    return %c0_i32, %c0_i32_0, %c0_i32_1 : i32, i32, i32
  }
  func.func @transform_3(%arg0: i32) -> (i32, i32, i32) {
    %c0_i32 = arith.constant 0 : i32
    %c0_i32_0 = arith.constant 0 : i32
    %c0_i32_1 = arith.constant 0 : i32
    return %arg0, %c0_i32, %c0_i32_0 : i32, i32, i32
  }
}

</mosaic_0001>

<bundles_post_ra>
// kernel: qkv_attention_mlp_forward.1
= control target key start
LH: loop header
LB: loop body
LE: loop exit
PB: predicated region body
PF: predicated region fallthrough
CT: control target
= control target key end

     0   :  { %8 = vsyncpa [#allocation3], 0  ;;  %s2987_s0 = inlined_call_operand.hbm [shape: f32[2,8,128], index: 0, kind: input, shape index: {}]   ;;  %s2988_s1 = inlined_call_operand.hbm [shape: bf16[9,128,128], index: 1, kind: input, shape index: {}]   ;;  %s2989_s2 = inlined_call_operand.hbm [shape: f32[9,1,128], index: 2, kind: input, shape index: {}]   ;;  %s2990_s3 = inlined_call_operand.hbm [shape: f32[2,8,128], index: 3, kind: output, shape index: {}]  }
   0x1   :  { %10 = vsyncpa [#allocation3 + $0x1], 0 }
   0x2   :  { %11 = vsyncpa [#allocation6], 0 }
   0x3   :  { %12 = vsyncpa [#allocation4], 0 }
   0x4   :  { %14 = vsyncpa [#allocation4 + $0x1], 0  ;;  %s2623_s12 = smov 0   ;;  %s2625_s13 = smov 0  }
   0x5   :  { %s2627_s14 = smov 0   ;;  %s2629_s15 = smov 0  }
   0x6 LB: > { %s2644_s16 = sadd.s32 4294967295, %s2588_s15   ;;  %s1834_s17 = sadd.s32 4294967294, %s2588_s15   ;;  %s2588_s15 = sphi %s2629_s15, %s3011_s15   ;;  %s2584_s14 = sphi %s2627_s14, %s3010_s14   ;;  %s2580_s13 = sphi %s2625_s13, %s3009_s13   ;;  %s2576_s12 = sphi %s2623_s12, %s3008_s12  }
   0x7   : > { %p40_p0 = scmp.ne.s32.totalorder %s2580_s13, %s2576_s12  ;;  %p2991_p1 = scmp.eq.s32.totalorder %s2644_s16, 0 }
   0x8   : > { %p106_p2 = scmp.eq.s32.totalorder %s2644_s16, 1  ;;  %p112_p3 = scmp.eq.s32.totalorder %s1834_s17, 1 }
   0x9   : > { %p2653_p4 = por %p2991_p1, %p40_p0  ;;  %p1835_p5 = scmp.ge.s32.totalorder %s2588_s15, 1 }
   0xa   : > { %p2658_p6 = por %p112_p3, %p40_p0  ;;  %p119_p7 = scmp.lt.s32.totalorder %s2588_s15, 3 }
   0xb   : > { %s2995_s18 = scalar_select %p2653_p4, 1, 0 }
   0xc   : > { %s2996_s19 = scalar_select %p2658_p6, 1, 0 }
   0xd   : > { %p2663_p8 = pnand %p1835_p5, %p119_p7  ;;  %s2590_s21 = smov [#allocation5]  }
   0xe   : > { %s131_s22 = sshll.u32 %s2590_s21, 4  ;;  %s2591_s24 = smov [#allocation7]   ;;  %s132_s22 = int_to_ptr.vmem [resolvable:$true] %s131_s22 }
   0xf   : > { %s2997_s20 = scalar_select %p2663_p8, 1, 0 }
  0x10   : > { %p2276_p9 = pneg %p2663_p8  ;;  %s144_s25 = sshll.u32 %s2591_s24, 4  ;;  %s2676_s25 = int_to_ptr.vmem [resolvable:$true] %s144_s25 }
  0x11   : > { %s2451_s26 = scalar_lea.vmem %s132_s22, 9216  ;;  %p2459_p5 = scmp.lt.s32.totalorder %s132_s22, %s132_s22 }
  0x12   : > { %p2672_p11 = pnand %p2276_p9, %p2991_p1  ;;  %p2452_p13 = scmp.ne.s32.totalorder %s132_s22, %s2451_s26 }
  0x13   : > { %p2460_p7 = scmp.lt.s32.totalorder %s2451_s26, %s2451_s26 }
  0x14   : > { %p2442_p12 = pneg %p2672_p11 }
  0x15   : > { %p2461_p9 = por %p2460_p7, %p2459_p5 }
  0x16   : > { %p2454_p0 = pnand %p2452_p13, %p2442_p12 }
  0x18   : > { %p2455_p3 = pneg %p2454_p0 }
  0x1a   : > { %p2462_p10 = pnand %p2461_p9, %p2455_p3 }
  0x1c   : > { %2465 = shalt.err (!%p2462_p10)
}
  0x1d   : > { %s2592_s27 = smov 64   ;;  %s2593_s28 = smov 4  }
  0x1e   : > { %2279 = dma.hbm_to_vmem [thread:$0]  (!%p2672_p11), %s2988_s1, 9216, %s132_s22, [#allocation6], %s2592_s27, %s2592_s27, %s2593_s28  }
  0x1f   : > { %s2477_s4 = scalar_lea.vmem %s2676_s25, 144  ;;  %s2484_s5 = scalar_lea.vmem %s2676_s25, 160 }
  0x20   : > { %p2478_p13 = scmp.ne.s32.totalorder %s2676_s25, %s2477_s4  ;;  %p2485_p10 = scmp.lt.s32.totalorder %s2676_s25, %s2676_s25 }
  0x21   : > { %p2486_p5 = scmp.lt.s32.totalorder %s2484_s5, %s2477_s4 }
  0x22   : > { %p2480_p0 = pnand %p2478_p13, %p2442_p12 }
  0x23   : > { %p2487_p7 = por %p2486_p5, %p2485_p10 }
  0x24   : > { %p2481_p3 = pneg %p2480_p0 }
  0x26   : > { %p2488_p9 = pnand %p2487_p7, %p2481_p3 }
  0x28   : > { %2491 = shalt.err (!%p2488_p9)
}
  0x29   : > { %s2594_s6 = smov 16   ;;  %s2595_s7 = smov 1  }
  0x2a   : > { %2282 = dma.hbm_to_vmem [thread:$0]  (!%p2672_p11), %s2989_s2, 144, %s2676_s25, [#allocation6], %s2594_s6, %s2594_s6, %s2595_s7  }
  0x2b   : > { %s2703_s10 = sadd.s32 1, %s2588_s15   ;;  %s27_s17 = sadd.s32 1, %s2584_s14 }
  0x2c   : > { %s24_s11 = ssub.s32 %s2588_s15, %s2703_s10  ;;  %p34_p13 = scmp.ne.s32.totalorder %s2584_s14, %s2580_s13 }
  0x2d   : > { %p25_p12 = scmp.eq.s32.totalorder %s24_s11, 0  ;;  %p35_p0 = scmp.eq.s32.totalorder %s2588_s15, 0 }
  0x2e   : > { %p2716_p10 = por %p106_p2, %p34_p13  ;;  %p2293_p5 = scmp.lt.s32.totalorder %s2588_s15, 2 }
  0x2f   : > { %s2712_s21 = scalar_select %p25_p12, %s2584_s14, %s27_s17  }
  0x30   : > { %p36_p3 = por %p35_p0, %p34_p13  ;;  %s158_s23 = sand.u32 1, %s2584_s14  }
  0x31   : > { %s2999_s22 = scalar_select %p2716_p10, 1, 0 }
  0x32   : > { %s1839_s24 = sshll.u32 %s158_s23, 3  ;;  %s1840_s25 = sshll.u32 %s2588_s15, 7 }
  0x33   : > { %s2726_s28 = scalar_lea.hbm %s2987_s0, %s1840_s25  ;;  %s162_s29 = scalar_lea.vmem [#allocation2], %s1839_s24 }
  0x34   : > { %s169_s30 = sshll.u32 %s162_s29, 4  ;;  %p2728_p11 = pnand %p2293_p5, %p36_p3  ;;  %s170_s30 = int_to_ptr.vmem [resolvable:$true] %s169_s30 }
  0x35   : > { %s159_s5 = scalar_lea.sflag [#allocation3], %s158_s23  ;;  %s2492_s6 = scalar_lea.hbm %s2726_s28, 128 }
  0x36   : > { %p2493_p2 = scmp.ne.s32.totalorder %s2726_s28, %s2492_s6  ;;  %p2494_p7 = pneg %p2728_p11 }
  0x37   : > { %s2497_s9 = scalar_lea.hbm %s2987_s0, 256  ;;  %p2498_p13 = scmp.lt.s32.totalorder %s2726_s28, %s2987_s0 }
  0x38   : > { %p2495_p9 = pnand %p2494_p7, %p2493_p2  ;;  %p2499_p0 = scmp.lt.s32.totalorder %s2497_s9, %s2492_s6 }
  0x3a   : > { %p2496_p12 = pneg %p2495_p9  ;;  %p2500_p3 = por %p2499_p0, %p2498_p13 }
  0x3c   : > { %p2501_p5 = pnand %p2500_p3, %p2496_p12 }
  0x3e   : > { %2504 = shalt.err (!%p2501_p5)
}
  0x3f   : > { %s2505_s24 = scalar_lea.vmem %s170_s30, 128  ;;  %s2596_s23 = smov [#allocation2]  }
  0x40   : > { %p2506_p1 = scmp.ne.s32.totalorder %s170_s30, %s2505_s24  ;;  %s2510_s25 = sshll.u32 %s2596_s23, 4  ;;  %s2511_s25 = int_to_ptr.vmem [resolvable:$false] %s2510_s25 }
  0x41   : > { %s2512_s26 = scalar_lea.vmem %s2511_s25, 256  ;;  %p2513_p2 = scmp.lt.s32.totalorder %s170_s30, %s2511_s25 }
  0x42   : > { %p2508_p6 = pnand %p2506_p1, %p2494_p7  ;;  %p2514_p9 = scmp.lt.s32.totalorder %s2512_s26, %s2505_s24 }
  0x44   : > { %p2509_p10 = pneg %p2508_p6  ;;  %p2515_p4 = por %p2514_p9, %p2513_p2 }
  0x46   : > { %p2516_p8 = pnand %p2515_p4, %p2509_p10 }
  0x48   : > { %2519 = shalt.err (!%p2516_p8)
}
  0x49   : > { %2286 = dma.hbm_to_vmem [thread:$0]  (!%p2728_p11), %s2726_s28, 128, %s170_s30, %s159_s5  }
  0x4a   : > { %p3001_p12 = scmp.ne.s32.totalorder %s2997_s20, 0 }
  0x4b   : > { %s2749_s27 = sand.u32 (!%p3001_p12), 1, %s2580_s13   ;;  %p3002_p1 = scmp.ne.s32.totalorder (!%p3001_p12), %s2995_s18, 0 }
  0x4c   : > { %178 = sbr.rel (%p3001_p12) target bundleno = 2374 (0x946), region = 32  ;;  %s1842_s29 = sshll.u32 (!%p3001_p12), %s2749_s27, 3 }
  0x4d   : > { %s181_s6 = scalar_lea.sflag (!%p3001_p12), [#allocation3], %s2749_s27  ;;  %s2755_s7 = scalar_lea.vmem (!%p3001_p12), [#allocation2], %s1842_s29 }
  0x51   : > { %2563 = dma.done.wait (%p3002_p1), %s181_s6, 128  }
  0x52   : > { %2565 = vsyncadd (%p3002_p1), %s181_s6, 4294967168  ;;  %p3003_p4 = scmp.eq.s32.totalorder %s2644_s16, 0 }
  0x54   : > { %2567 = dma.done.wait (%p3003_p4), [#allocation6], 9360   ;;  %p3004_p6 = pmov %p3003_p4 }
  0x55   : > { %v2597_v0 = vmov 0.0   ;;  %vm2598_vm0 = vmmov 0   ;;  %v2340_v1 = vld [vmem:[#allocation5 + $0x38] sm:$0xff]   ;;  %v2341_v2 = vld [vmem:[#allocation5 + $0x30] sm:$0xff]   ;;  %v2342_v3 = vld [vmem:[#allocation5 + $0x28] sm:$0xff]   ;;  %vm1272_vm1 = vcmask 261120  }
  0x56   : > { %2569 = vsyncadd (%p3004_p6), [#allocation6], 4294957936  ;;  %2036 = vmatprep.subr.bf16.mxu0 %v2597_v0  ;;  %2052 = vmatprep.mubr.msk.bf16.mxu0 %vm2598_vm0, %v2597_v0  ;;  %v2348_v4 = vld [vmem:[#allocation5 + $0x78] sm:$0xff]   ;;  %v2343_v5 = vld [vmem:[#allocation5 + $0x20] sm:$0xff]   ;;  %s2599_s18 = smov 96   ;;  %s2600_s20 = smov 64  }
  0x57   : > { %2056 = vmatprep.subr.bf16.mxu1 %v2597_v0  ;;  %2072 = vmatprep.mubr.msk.bf16.mxu1 %vm2598_vm0, %v2597_v0  ;;  %v2349_v6 = vld [vmem:[#allocation5 + $0x70] sm:$0xff]   ;;  %v2344_v7 = vld [vmem:[#allocation5 + $0x18] sm:$0xff]   ;;  %v2346_v9 = vld [vmem:[#allocation5 + $0x8] sm:$0xff]   ;;  %s2601_s28 = smov 32   ;;  %vm1319_vm2 = vcmask 64512   ;;  %vm1335_vm3 = vcmask 1043456  }
  0x58   : > { %2037 = vmatpush3.bf16.msra.mxu0 %v2340_v1  ;;  %2057 = vmatpush3.bf16.msra.mxu1 %v2348_v4  ;;  %v2345_v8 = vld [vmem:[#allocation5 + $0x10] sm:$0xff]   ;;  %v2347_v10 = vld [vmem:[#allocation5] sm:$0xff]   ;;  %v2350_v13 = vld [vmem:[#allocation5 + $0x68] sm:$0xff]   ;;  %s2912_s30 = scalar_lea.vmem [#allocation8], %s1842_s29  ;;  %vm1497_vm4 = vcmask 523520   ;;  %vm1613_vm5 = vcmask 785920  }
  0x59   : > { %2038 = vmatprep.subr.bf16.mxu0 %v2597_v0  ;;  %2058 = vmatprep.subr.bf16.mxu1 %v2597_v0  ;;  %v216_v11 = vld [vmem:[%s2755_s7] sm:$0xff]  ;;  %v2351_v14 = vld [vmem:[#allocation5 + $0x60] sm:$0xff]   ;;  %v2354_v17 = vld [vmem:[#allocation5 + $0x48] sm:$0xff]   ;;  %s1936_s4 = sshll.u32 %s2644_s16, 7  ;;  %s1745_s5 = sshll.u32 %s2912_s30, 4  ;;  %vm1729_vm6 = vcmask 1048320   ;;  %s1746_s5 = int_to_ptr.vmem [resolvable:$true] %s1745_s5 }
  0x5a   : > { %v2781_v12 = vpack.c.bf16 %v216_v11, %v216_v11  ;;  %v2352_v15 = vld [vmem:[#allocation5 + $0x58] sm:$0xff]   ;;  %v2353_v16 = vld [vmem:[#allocation5 + $0x50] sm:$0xff]   ;;  %v2355_v18 = vld [vmem:[#allocation5 + $0x40] sm:$0xff]   ;;  %s2949_s11 = scalar_lea.hbm %s2990_s3, %s1936_s4  ;;  %s1732_s17 = scalar_lea.sflag [#allocation4], %s2749_s27 }
  0x5b   : > { %v2364_v19 = vld [vmem:[#allocation5 + $0xb8] sm:$0xff]   ;;  %v2365_v20 = vld [vmem:[#allocation5 + $0xb0] sm:$0xff]   ;;  %v1846_v21 = vld [vmem:[#allocation7] ss:$0 sm:$0xff]  ;;  %s2520_s24 = scalar_lea.vmem %s1746_s5, 128  ;;  %p3005_p10 = scmp.ne.s32.totalorder %s2999_s22, 0 }
  0x5c   : > { %2039 = vmatpush3.bf16.msra.mxu0 %v2341_v2  ;;  %2059 = vmatpush3.bf16.msra.mxu1 %v2349_v6  ;;  %v2356_v32 = vld [vmem:[#allocation5 + $0xf8] sm:$0xff]   ;;  %v2357_v34 = vld [vmem:[#allocation5 + $0xf0] sm:$0xff]   ;;  %v2358_v35 = vld [vmem:[#allocation5 + $0xe8] sm:$0xff]   ;;  %p2521_p8 = scmp.ne.s32.totalorder %s1746_s5, %s2520_s24  ;;  %s2602_s23 = smov [#allocation8]  }
  0x5d   : > { %2040 = vmatprep.subr.bf16.mxu0 %v2597_v0  ;;  %2060 = vmatprep.subr.bf16.mxu1 %v2597_v0  ;;  %v2359_v36 = vld [vmem:[#allocation5 + $0xe0] sm:$0xff]   ;;  %v2360_v37 = vld [vmem:[#allocation5 + $0xd8] sm:$0xff]   ;;  %v2361_v38 = vld [vmem:[#allocation5 + $0xd0] sm:$0xff]   ;;  %s2524_s25 = sshll.u32 %s2602_s23, 4  ;;  %s2525_s25 = int_to_ptr.vmem [resolvable:$false] %s2524_s25 }
  0x5e   : > { %v2362_v39 = vld [vmem:[#allocation5 + $0xc8] sm:$0xff]   ;;  %v2363_v40 = vld [vmem:[#allocation5 + $0xc0] sm:$0xff]   ;;  %v2368_v43 = vld [vmem:[#allocation5 + $0x98] sm:$0xff]   ;;  %p2522_p11 = pnand %p2521_p8, %p3005_p10  ;;  %s2526_s16 = scalar_lea.vmem %s2525_s25, 256 }
  0x5f   : > { %v2366_v41 = vld [vmem:[#allocation5 + $0xa8] sm:$0xff]   ;;  %v2367_v42 = vld [vmem:[#allocation5 + $0xa0] sm:$0xff]   ;;  %v2369_v44 = vld [vmem:[#allocation5 + $0x90] sm:$0xff]   ;;  %p2527_p13 = scmp.lt.s32.totalorder %s1746_s5, %s2525_s25  ;;  %p2528_p0 = scmp.lt.s32.totalorder %s2526_s16, %s2520_s24 }
  0x60   : > { %2041 = vmatpush3.bf16.msra.mxu0 %v2342_v3  ;;  %2061 = vmatpush3.bf16.msra.mxu1 %v2350_v13  ;;  %v2370_v45 = vld [vmem:[#allocation5 + $0x88] sm:$0xff]   ;;  %v2371_v46 = vld [vmem:[#allocation5 + $0x80] sm:$0xff]   ;;  %v2372_v58 = vld [vmem:[#allocation5 + $0x138] sm:$0xff]   ;;  %p2523_p7 = pneg %p2522_p11 }
  0x61   : > { %2042 = vmatprep.subr.bf16.mxu0 %v2597_v0  ;;  %2062 = vmatprep.subr.bf16.mxu1 %v2597_v0  ;;  %v1855_v47 = vld [vmem:[#allocation7 + $0x1] ss:$0 sm:$0xff]  ;;  %v2373_v60 = vld [vmem:[#allocation5 + $0x130] sm:$0xff]   ;;  %v1873_v61 = vld [vmem:[#allocation7 + $0x3] ss:$0 sm:$0xff]  ;;  %p2529_p3 = por %p2528_p0, %p2527_p13 }
  0x62   : > { %v2374_v62 = vld [vmem:[#allocation5 + $0x128] sm:$0xff]   ;;  %v2375_v3 = vld [vmem:[#allocation5 + $0x120] sm:$0xff]  }
  0x63   : > { %v2379_v11 = vld [vmem:[#allocation5 + $0x100] sm:$0xff]   ;;  %p2530_p5 = pnand %p2529_p3, %p2523_p7 }
  0x64   : > { %2043 = vmatpush3.bf16.msra.mxu0 %v2343_v5  ;;  %2063 = vmatpush3.bf16.msra.mxu1 %v2351_v14 }
  0x65   : > { %2044 = vmatprep.subr.bf16.mxu0 %v2597_v0  ;;  %2064 = vmatprep.subr.bf16.mxu1 %v2597_v0 }
  0x68   : > { %2045 = vmatpush3.bf16.msra.mxu0 %v2344_v7  ;;  %2065 = vmatpush3.bf16.msra.mxu1 %v2352_v15  ;;  %v2376_v7 = vld [vmem:[#allocation5 + $0x118] sm:$0xff]  }
  0x69   : > { %2046 = vmatprep.subr.bf16.mxu0 %v2597_v0  ;;  %2066 = vmatprep.subr.bf16.mxu1 %v2597_v0 }
  0x6c   : > { %2047 = vmatpush3.bf16.msra.mxu0 %v2345_v8  ;;  %2067 = vmatpush3.bf16.msra.mxu1 %v2353_v16  ;;  %v2377_v8 = vld [vmem:[#allocation5 + $0x110] sm:$0xff]   ;;  %v2380_v16 = vld [vmem:[#allocation5 + $0x1b8] sm:$0xff]  }
  0x6d   : > { %2048 = vmatprep.subr.bf16.mxu0 %v2597_v0  ;;  %2068 = vmatprep.subr.bf16.mxu1 %v2597_v0 }
  0x70   : > { %2049 = vmatpush3.bf16.msra.mxu0 %v2346_v9  ;;  %2069 = vmatpush3.bf16.msra.mxu1 %v2354_v17  ;;  %v2378_v9 = vld [vmem:[#allocation5 + $0x108] sm:$0xff]  }
  0x71   : > { %2050 = vmatprep.subr.bf16.mxu0 %v2597_v0  ;;  %2070 = vmatprep.subr.bf16.mxu1 %v2597_v0 }
  0x74   : > { %2051 = vmatpush3.bf16.msra.mxu0 %v2347_v10  ;;  %2071 = vmatpush3.bf16.msra.mxu1 %v2355_v18  ;;  %v2381_v18 = vld [vmem:[#allocation5 + $0x1b0] sm:$0xff]  }
  0x75   : > { %2076 = vmatprep.subr.bf16.mxu0 %v2597_v0  ;;  %2096 = vmatprep.subr.bf16.mxu1 %v2597_v0 }
  0x77   : > { %2053 = vmatmul.mubr.bf16.vlgmr.msra.gmra.mxu0 %v2781_v12 }
  0x78   : > { %2092 = vmatprep.mubr.msk.bf16.mxu0 %vm2598_vm0, %v2597_v0  ;;  %2077 = vmatpush3.bf16.msra.mxu0 %v2364_v19  ;;  %v2382_v19 = vld [vmem:[#allocation5 + $0x1a8] sm:$0xff]  }
  0x79   : > { %2078 = vmatprep.subr.bf16.mxu0 %v2597_v0 }
  0x7c   : > { %2079 = vmatpush3.bf16.msra.mxu0 %v2365_v20  ;;  %v2383_v20 = vld [vmem:[#allocation5 + $0x1a0] sm:$0xff]  }
  0x7d   : > { %2080 = vmatprep.subr.bf16.mxu0 %v2597_v0 }
  0x80   : > { %2081 = vmatpush3.bf16.msra.mxu0 %v2366_v41 }
  0x81   : > { %2082 = vmatprep.subr.bf16.mxu0 %v2597_v0 }
  0x84   : > { %2083 = vmatpush3.bf16.msra.mxu0 %v2367_v42 }
  0x85   : > { %2084 = vmatprep.subr.bf16.mxu0 %v2597_v0 }
  0x88   : > { %2085 = vmatpush3.bf16.msra.mxu0 %v2368_v43 }
  0x89   : > { %2086 = vmatprep.subr.bf16.mxu0 %v2597_v0 }
  0x8c   : > { %2087 = vmatpush3.bf16.msra.mxu0 %v2369_v44 }
  0x8d   : > { %2088 = vmatprep.subr.bf16.mxu0 %v2597_v0 }
  0x90   : > { %2089 = vmatpush3.bf16.msra.mxu0 %v2370_v45 }
  0x91   : > { %2090 = vmatprep.subr.bf16.mxu0 %v2597_v0 }
  0x94   : > { %2091 = vmatpush3.bf16.msra.mxu0 %v2371_v46 }
  0x95   : > { %2116 = vmatprep.subr.bf16.mxu0 %v2597_v0 }
 0x137   : > { %v323_v22 = vpop.f32.mrf.mxu0 }
 0x138   : > { %v324_v23 = vadd.f32 %v1846_v21, %v323_v22  ;;  %v2384_v21 = vld [vmem:[#allocation5 + $0x198] sm:$0xff]   ;;  %v2385_v22 = vld [vmem:[#allocation5 + $0x190] sm:$0xff]  }
 0x139   : > { %v2054_v24 = vpop.f32.mrf.mxu0 }
 0x13a   : > { %v330_v25 = vmul.f32 0.70710677, %v324_v23  ;;  %v329_v29 = vmul.f32 0.5, %v324_v23  ;;  %v2386_v23 = vld [vmem:[#allocation5 + $0x188] sm:$0xff]   ;;  %v2387_v24 = vld [vmem:[#allocation5 + $0x180] sm:$0xff]  }
 0x13b   : > { %v326_v26 = vpop.f32.mrf.mxu0 }
 0x13c   : > { %2412 = verf.f32 %v330_v25  ;;  %v2388_v25 = vld [vmem:[#allocation5 + $0x178] sm:$0xff]   ;;  %v2389_v26 = vld [vmem:[#allocation5 + $0x170] sm:$0xff]  }
 0x13d   : > { %v2055_v27 = vpop.f32.mrf.mxu0 }
 0x13e   : > { %v2390_v27 = vld [vmem:[#allocation5 + $0x168] sm:$0xff]  }
 0x149   : > { %v2413_v28 = vpop.eup %2412 }
 0x14a   : > { %v332_v30 = vadd.f32 1.0, %v2413_v28  ;;  %v2391_v28 = vld [vmem:[#allocation5 + $0x160] sm:$0xff]  }
 0x14c   : > { %v333_v31 = vmul.f32 %v332_v30, %v329_v29  ;;  %v2393_v29 = vld [vmem:[#allocation5 + $0x150] sm:$0xff]   ;;  %v2394_v30 = vld [vmem:[#allocation5 + $0x148] sm:$0xff]  }
 0x14e   : > { %v334_v33 = vpack.c.bf16 %v333_v31, %v333_v31  ;;  %v2395_v31 = vld [vmem:[#allocation5 + $0x140] sm:$0xff]  }
 0x150   : > { %2073 = vmatmul.mubr.bf16.vlgmr.msra.gmra.mxu1 %v334_v33 }
 0x151   : > { %2097 = vmatpush3.bf16.msra.mxu1 %v2356_v32  ;;  %2112 = vmatprep.mubr.msk.bf16.mxu1 %vm2598_vm0, %v2597_v0 }
 0x152   : > { %2098 = vmatprep.subr.bf16.mxu1 %v2597_v0 }
 0x155   : > { %2099 = vmatpush3.bf16.msra.mxu1 %v2357_v34 }
 0x156   : > { %2100 = vmatprep.subr.bf16.mxu1 %v2597_v0 }
 0x159   : > { %2101 = vmatpush3.bf16.msra.mxu1 %v2358_v35 }
 0x15a   : > { %2102 = vmatprep.subr.bf16.mxu1 %v2597_v0 }
 0x15d   : > { %2103 = vmatpush3.bf16.msra.mxu1 %v2359_v36  ;;  %v1882_v36 = vld [vmem:[#allocation7 + $0x4] ss:$0 sm:$0xff] }
 0x15e   : > { %2104 = vmatprep.subr.bf16.mxu1 %v2597_v0 }
 0x161   : > { %2105 = vmatpush3.bf16.msra.mxu1 %v2360_v37 }
 0x162   : > { %2106 = vmatprep.subr.bf16.mxu1 %v2597_v0 }
 0x165   : > { %2107 = vmatpush3.bf16.msra.mxu1 %v2361_v38 }
 0x166   : > { %2108 = vmatprep.subr.bf16.mxu1 %v2597_v0 }
 0x169   : > { %2109 = vmatpush3.bf16.msra.mxu1 %v2362_v39 }
 0x16a   : > { %2110 = vmatprep.subr.bf16.mxu1 %v2597_v0 }
 0x16d   : > { %2111 = vmatpush3.bf16.msra.mxu1 %v2363_v40 }
 0x16e   : > { %2136 = vmatprep.subr.bf16.mxu1 %v2597_v0 }
 0x170   : > { %2113 = vmatmul.mubr.bf16.vlgmr.msra.gmra.mxu1 %v2781_v12 }
 0x171   : > { %2152 = vmatprep.mubr.msk.bf16.mxu1 %vm2598_vm0, %v2597_v0  ;;  %2137 = vmatpush3.bf16.msra.mxu1 %v2388_v25 }
 0x172   : > { %2138 = vmatprep.subr.bf16.mxu1 %v2597_v0 }
 0x175   : > { %2139 = vmatpush3.bf16.msra.mxu1 %v2389_v26 }
 0x176   : > { %2140 = vmatprep.subr.bf16.mxu1 %v2597_v0 }
 0x179   : > { %2141 = vmatpush3.bf16.msra.mxu1 %v2390_v27 }
 0x17a   : > { %2142 = vmatprep.subr.bf16.mxu1 %v2597_v0 }
 0x17d   : > { %2143 = vmatpush3.bf16.msra.mxu1 %v2391_v28  ;;  %v2411_v28 = vld [vmem:[#allocation5 + $0x200] sm:$0xff]  }
 0x17e   : > { %2144 = vmatprep.subr.bf16.mxu1 %v2597_v0 }
 0x210   : > { %v442_v48 = vpop.f32.mrf.mxu1 }
 0x211   : > { %v443_v49 = vadd.f32 %v1855_v47, %v442_v48  ;;  %v2396_v47 = vld [vmem:[#allocation5 + $0x1f8] sm:$0xff]  }
 0x212   : > { %v2074_v50 = vpop.f32.mrf.mxu1 }
 0x213   : > { %v449_v51 = vmul.f32 0.70710677, %v443_v49  ;;  %v448_v55 = vmul.f32 0.5, %v443_v49  ;;  %v2397_v49 = vld [vmem:[#allocation5 + $0x1f0] sm:$0xff]   ;;  %v1900_v50 = vld [vmem:[#allocation7 + $0x6] ss:$0 sm:$0xff] }
 0x214   : > { %v445_v52 = vpop.f32.mrf.mxu1 }
 0x215   : > { %2414 = verf.f32 %v449_v51  ;;  %v2398_v51 = vld [vmem:[#allocation5 + $0x1e8] sm:$0xff]  }
 0x216   : > { %v2075_v53 = vpop.f32.mrf.mxu1 }
 0x222   : > { %v2415_v54 = vpop.eup %2414 }
 0x223   : > { %v451_v56 = vadd.f32 1.0, %v2415_v54  ;;  %v2399_v54 = vld [vmem:[#allocation5 + $0x1e0] sm:$0xff]  }
 0x225   : > { %v452_v57 = vmul.f32 %v451_v56, %v448_v55 }
 0x227   : > { %v453_v59 = vpack.c.bf16 %v452_v57, %v452_v57 }
 0x229   : > { %2093 = vmatmul.mubr.bf16.vlgmr.msra.gmra.mxu0 %v453_v59 }
 0x22a   : > { %2117 = vmatpush3.bf16.msra.mxu0 %v2372_v58  ;;  %2132 = vmatprep.mubr.msk.bf16.mxu0 %vm2598_vm0, %v2597_v0  ;;  %v2400_v58 = vld [vmem:[#allocation5 + $0x1d8] sm:$0xff]  }
 0x22b   : > { %2118 = vmatprep.subr.bf16.mxu0 %v2597_v0 }
 0x22e   : > { %2119 = vmatpush3.bf16.msra.mxu0 %v2373_v60  ;;  %v2401_v60 = vld [vmem:[#allocation5 + $0x1d0] sm:$0xff]  }
 0x22f   : > { %2120 = vmatprep.subr.bf16.mxu0 %v2597_v0 }
 0x230   : > { %v675_v63 = vpop.f32.mrf.mxu1 }
 0x231   : > { %v676_v1 = vadd.f32 %v1873_v61, %v675_v63  ;;  %v2402_v61 = vld [vmem:[#allocation5 + $0x1c8] sm:$0xff]  }
 0x232   : > { %v2114_v2 = vpop.f32.mrf.mxu1  ;;  %2121 = vmatpush3.bf16.msra.mxu0 %v2374_v62 }
 0x233   : > { %v682_v4 = vmul.f32 0.70710677, %v676_v1  ;;  %2122 = vmatprep.subr.bf16.mxu0 %v2597_v0  ;;  %v681_v13 = vmul.f32 0.5, %v676_v1  ;;  %v2403_v1 = vld [vmem:[#allocation5 + $0x1c0] sm:$0xff]  }
 0x234   : > { %v678_v5 = vpop.f32.mrf.mxu1 }
 0x235   : > { %2416 = verf.f32 %v682_v4  ;;  %v1891_v5 = vld [vmem:[#allocation7 + $0x5] ss:$0 sm:$0xff] }
 0x236   : > { %v2115_v6 = vpop.f32.mrf.mxu1  ;;  %2123 = vmatpush3.bf16.msra.mxu0 %v2375_v3 }
 0x237   : > { %2124 = vmatprep.subr.bf16.mxu0 %v2597_v0  ;;  %v1864_v6 = vld [vmem:[#allocation7 + $0x2] ss:$0 sm:$0xff] }
 0x23a   : > { %2125 = vmatpush3.bf16.msra.mxu0 %v2376_v7 }
 0x23b   : > { %2126 = vmatprep.subr.bf16.mxu0 %v2597_v0 }
 0x23e   : > { %2127 = vmatpush3.bf16.msra.mxu0 %v2377_v8 }
 0x23f   : > { %2128 = vmatprep.subr.bf16.mxu0 %v2597_v0 }
 0x242   : > { %v2417_v10 = vpop.eup %2416  ;;  %2129 = vmatpush3.bf16.msra.mxu0 %v2378_v9 }
 0x243   : > { %v684_v14 = vadd.f32 1.0, %v2417_v10  ;;  %2130 = vmatprep.subr.bf16.mxu0 %v2597_v0 }
 0x245   : > { %v685_v15 = vmul.f32 %v684_v14, %v681_v13 }
 0x246   : > { %2131 = vmatpush3.bf16.msra.mxu0 %v2379_v11 }
 0x247   : > { %v686_v17 = vpack.c.bf16 %v685_v15, %v685_v15  ;;  %2156 = vmatprep.subr.bf16.mxu0 %v2597_v0 }
 0x249   : > { %2133 = vmatmul.mubr.bf16.vlgmr.msra.gmra.mxu0 %v686_v17  ;;  %v2404_v17 = vld [vmem:[#allocation5 + $0x238] sm:$0xff]  }
 0x24a   : > { %2157 = vmatpush3.bf16.msra.mxu0 %v2380_v16  ;;  %2172 = vmatprep.mubr.msk.bf16.mxu0 %vm2598_vm0, %v2597_v0 }
 0x24b   : > { %2158 = vmatprep.subr.bf16.mxu0 %v2597_v0 }
 0x24e   : > { %2159 = vmatpush3.bf16.msra.mxu0 %v2381_v18  ;;  %v2405_v18 = vld [vmem:[#allocation5 + $0x230] sm:$0xff]  }
 0x24f   : > { %2160 = vmatprep.subr.bf16.mxu0 %v2597_v0 }
 0x252   : > { %2161 = vmatpush3.bf16.msra.mxu0 %v2382_v19  ;;  %v2406_v19 = vld [vmem:[#allocation5 + $0x228] sm:$0xff]  }
 0x253   : > { %2162 = vmatprep.subr.bf16.mxu0 %v2597_v0 }
 0x256   : > { %2163 = vmatpush3.bf16.msra.mxu0 %v2383_v20  ;;  %v2407_v20 = vld [vmem:[#allocation5 + $0x220] sm:$0xff]  }
 0x257   : > { %2164 = vmatprep.subr.bf16.mxu0 %v2597_v0 }
 0x25a   : > { %2165 = vmatpush3.bf16.msra.mxu0 %v2384_v21  ;;  %v2408_v21 = vld [vmem:[#allocation5 + $0x218] sm:$0xff]  }
 0x25b   : > { %2166 = vmatprep.subr.bf16.mxu0 %v2597_v0 }
 0x25e   : > { %2167 = vmatpush3.bf16.msra.mxu0 %v2385_v22  ;;  %v2409_v22 = vld [vmem:[#allocation5 + $0x210] sm:$0xff]  }
 0x25f   : > { %2168 = vmatprep.subr.bf16.mxu0 %v2597_v0 }
 0x262   : > { %2169 = vmatpush3.bf16.msra.mxu0 %v2386_v23  ;;  %v1909_v23 = vld [vmem:[#allocation7 + $0x7] ss:$0 sm:$0xff] }
 0x263   : > { %2170 = vmatprep.subr.bf16.mxu0 %v2597_v0 }
 0x266   : > { %2171 = vmatpush3.bf16.msra.mxu0 %v2387_v24  ;;  %v2410_v24 = vld [vmem:[#allocation5 + $0x208] sm:$0xff]  }
 0x267   : > { %2196 = vmatprep.subr.bf16.mxu0 %v2597_v0 }
 0x269   : > { %2173 = vmatmul.mubr.bf16.vlgmr.msra.gmra.mxu0 %v2781_v12  ;;  %v2392_v12 = vld [vmem:[#allocation5 + $0x158] sm:$0xff]  }
 0x26a   : > { %2212 = vmatprep.mubr.msk.bf16.mxu0 %vm2598_vm0, %v2597_v0  ;;  %2145 = vmatpush3.bf16.msra.mxu1 %v2392_v12 }
 0x26b   : > { %2146 = vmatprep.subr.bf16.mxu1 %v2597_v0  ;;  %2197 = vmatpush3.bf16.msra.mxu0 %v2404_v17 }
 0x26c   : > { %2198 = vmatprep.subr.bf16.mxu0 %v2597_v0 }
 0x26e   : > { %2147 = vmatpush3.bf16.msra.mxu1 %v2393_v29 }
 0x26f   : > { %2148 = vmatprep.subr.bf16.mxu1 %v2597_v0  ;;  %2199 = vmatpush3.bf16.msra.mxu0 %v2405_v18 }
 0x270   : > { %2200 = vmatprep.subr.bf16.mxu0 %v2597_v0 }
 0x272   : > { %2149 = vmatpush3.bf16.msra.mxu1 %v2394_v30 }
 0x273   : > { %2150 = vmatprep.subr.bf16.mxu1 %v2597_v0  ;;  %2201 = vmatpush3.bf16.msra.mxu0 %v2406_v19 }
 0x274   : > { %2202 = vmatprep.subr.bf16.mxu0 %v2597_v0 }
 0x276   : > { %2151 = vmatpush3.bf16.msra.mxu1 %v2395_v31 }
 0x277   : > { %2176 = vmatprep.subr.bf16.mxu1 %v2597_v0  ;;  %2203 = vmatpush3.bf16.msra.mxu0 %v2407_v20 }
 0x278   : > { %2204 = vmatprep.subr.bf16.mxu0 %v2597_v0 }
 0x27b   : > { %2205 = vmatpush3.bf16.msra.mxu0 %v2408_v21 }
 0x27c   : > { %2206 = vmatprep.subr.bf16.mxu0 %v2597_v0 }
 0x27f   : > { %2207 = vmatpush3.bf16.msra.mxu0 %v2409_v22 }
 0x280   : > { %2208 = vmatprep.subr.bf16.mxu0 %v2597_v0 }
 0x283   : > { %2209 = vmatpush3.bf16.msra.mxu0 %v2410_v24 }
 0x284   : > { %2210 = vmatprep.subr.bf16.mxu0 %v2597_v0 }
 0x287   : > { %2211 = vmatpush3.bf16.msra.mxu0 %v2411_v28 }
 0x288   : > { %2240 = vmatprep.subr.bf16.mxu0 %v2597_v0 }
 0x2e9   : > { %v2845_v32 = vpop.f32.mrf.mxu0 }
 0x2ea   : > { %v562_v10 = vadd.f32 %v1864_v6, %v2845_v32 }
 0x2eb   : > { %v2094_v33 = vpop.f32.mrf.mxu0 }
 0x2ec   : > { %v567_v16 = vpack.c.bf16 %v562_v10, %v562_v10 }
 0x2ed   : > { %v564_v34 = vpop.f32.mrf.mxu0 }
 0x2ef   : > { %v2095_v35 = vpop.f32.mrf.mxu0 }
 0x309   : > { %v794_v37 = vpop.f32.mrf.mxu0 }
 0x30a   : > { %v795_v38 = vadd.f32 %v1882_v36, %v794_v37 }
 0x30b   : > { %v2134_v39 = vpop.f32.mrf.mxu0 }
 0x30c   : > { %v801_v40 = vmul.f32 0.70710677, %v795_v38  ;;  %v800_v44 = vmul.f32 0.5, %v795_v38 }
 0x30d   : > { %v797_v41 = vpop.f32.mrf.mxu0 }
 0x30e   : > { %2418 = verf.f32 %v801_v40  ;;  %v1918_v41 = vld [vmem:[#allocation7 + $0x8] ss:$0 sm:$0xff] }
 0x30f   : > { %v2135_v42 = vpop.f32.mrf.mxu0 }
 0x31b   : > { %v2419_v43 = vpop.eup %2418 }
 0x31c   : > { %v803_v45 = vadd.f32 1.0, %v2419_v43 }
 0x31e   : > { %v804_v46 = vmul.f32 %v803_v45, %v800_v44 }
 0x320   : > { %v805_v48 = vpack.c.bf16 %v804_v46, %v804_v46 }
 0x322   : > { %2153 = vmatmul.mubr.bf16.vlgmr.msra.gmra.mxu1 %v805_v48 }
 0x323   : > { %2177 = vmatpush3.bf16.msra.mxu1 %v2396_v47  ;;  %2192 = vmatprep.mubr.msk.bf16.mxu1 %vm2598_vm0, %v2597_v0 }
 0x324   : > { %2178 = vmatprep.subr.bf16.mxu1 %v2597_v0 }
 0x327   : > { %2179 = vmatpush3.bf16.msra.mxu1 %v2397_v49 }
 0x328   : > { %2180 = vmatprep.subr.bf16.mxu1 %v2597_v0 }
 0x329   : > { %v1027_v52 = vpop.f32.mrf.mxu0 }
 0x32a   : > { %v1028_v53 = vadd.f32 %v1900_v50, %v1027_v52 }
 0x32b   : > { %2181 = vmatpush3.bf16.msra.mxu1 %v2398_v51  ;;  %v2174_v55 = vpop.f32.mrf.mxu0 }
 0x32c   : > { %v1034_v56 = vmul.f32 0.70710677, %v1028_v53  ;;  %2182 = vmatprep.subr.bf16.mxu1 %v2597_v0  ;;  %v1033_v62 = vmul.f32 0.5, %v1028_v53 }
 0x32d   : > { %v1030_v57 = vpop.f32.mrf.mxu0 }
 0x32e   : > { %2420 = verf.f32 %v1034_v56 }
 0x32f   : > { %2183 = vmatpush3.bf16.msra.mxu1 %v2399_v54  ;;  %v2175_v59 = vpop.f32.mrf.mxu0 }
 0x330   : > { %2184 = vmatprep.subr.bf16.mxu1 %v2597_v0 }
 0x333   : > { %2185 = vmatpush3.bf16.msra.mxu1 %v2400_v58 }
 0x334   : > { %2186 = vmatprep.subr.bf16.mxu1 %v2597_v0 }
 0x337   : > { %2187 = vmatpush3.bf16.msra.mxu1 %v2401_v60 }
 0x338   : > { %2188 = vmatprep.subr.bf16.mxu1 %v2597_v0 }
 0x33b   : > { %v2421_v63 = vpop.eup %2420  ;;  %2189 = vmatpush3.bf16.msra.mxu1 %v2402_v61 }
 0x33c   : > { %v1036_v2 = vadd.f32 1.0, %v2421_v63  ;;  %2190 = vmatprep.subr.bf16.mxu1 %v2597_v0 }
 0x33e   : > { %v1037_v3 = vmul.f32 %v1036_v2, %v1033_v62 }
 0x33f   : > { %2191 = vmatpush3.bf16.msra.mxu1 %v2403_v1 }
 0x340   : > { %v1038_v4 = vpack.c.bf16 %v1037_v3, %v1037_v3  ;;  %2216 = vmatprep.subr.bf16.mxu1 %v2597_v0 }
 0x342   : > { %2193 = vmatmul.mubr.bf16.vlgmr.msra.gmra.mxu1 %v1038_v4 }
 0x343   : > { %2218 = vmatprep.mubr.msk.bf16.mxu1 %vm2598_vm0, %v2597_v0 }
 0x3e2   : > { %v913_v7 = vpop.f32.mrf.mxu1 }
 0x3e3   : > { %v914_v8 = vadd.f32 %v1891_v5, %v913_v7 }
 0x3e4   : > { %v2154_v9 = vpop.f32.mrf.mxu1 }
 0x3e5   : > { %v2860_v11 = vpack.c.bf16 %v914_v8, %v914_v8 }
 0x3e6   : > { %v916_v13 = vpop.f32.mrf.mxu1 }
 0x3e7   : > { %1384 = vrot.lane.b32.xlu1 %v2860_v11, %s2599_s18  ;;  %v1277_v14 = vsel %vm1272_vm1, %v2860_v11, 0 }
 0x3e8   : > { %v2155_v15 = vpop.f32.mrf.mxu1  ;;  %2217 = vmatpush3.bf16.xpose.msra.mxu1 %v1277_v14 }
 0x3e9   : > { %2222 = vmatprep.subr.bf16.mxu1 %v2597_v0 }
 0x3eb   : > { %1381 = vrot.lane.b32.xlu1 %v567_v16, %s2599_s18 }
 0x3ef   : > { %1499 = vrot.lane.b32.xlu1 %v567_v16, %s2600_s20  ;;  %2219 = vmatmul.mubr.msk.bf16.vlgmr.msra.gmra.mxu1 %vm1272_vm1, %v567_v16 }
 0x3f0   : > { %2224 = vmatprep.mubr.msk.bf16.mxu1 %vm2598_vm0, %v2597_v0 }
 0x3f3   : > { %1617 = vrot.lane.b32.xlu1 %v2860_v11, %s2601_s28 }
 0x3f7   : > { %1615 = vrot.lane.b32.xlu1 %v567_v16, %s2601_s28 }
 0x402   : > { %v1146_v25 = vpop.f32.mrf.mxu1 }
 0x403   : > { %v1147_v26 = vadd.f32 %v1909_v23, %v1146_v25 }
 0x404   : > { %v2194_v27 = vpop.f32.mrf.mxu1 }
 0x405   : > { %v1153_v12 = vmul.f32 0.70710677, %v1147_v26  ;;  %v1152_v31 = vmul.f32 0.5, %v1147_v26 }
 0x406   : > { %v1149_v29 = vpop.f32.mrf.mxu1 }
 0x407   : > { %2422 = verf.f32 %v1153_v12 }
 0x408   : > { %v2195_v30 = vpop.f32.mrf.mxu1 }
 0x414   : > { %v2423_v32 = vpop.eup %2422 }
 0x415   : > { %v1155_v33 = vadd.f32 1.0, %v2423_v32 }
 0x417   : > { %v1156_v34 = vmul.f32 %v1155_v33, %v1152_v31 }
 0x419   : > { %v1157_v35 = vpack.c.bf16 %v1156_v34, %v1156_v34 }
 0x41b   : > { %2213 = vmatmul.mubr.bf16.vlgmr.msra.gmra.mxu0 %v1157_v35 }
 0x41c   : > { %2242 = vmatprep.mubr.msk.bf16.mxu0 %vm2598_vm0, %v2597_v0 }
 0x459   : > { %v1385_v54 = vpop.permute.xlu1 %1384 }
 0x45a   : > { %v1390_v2 = vsel %vm1272_vm1, %v1385_v54, 0 }
 0x45d   : > { %v1382_v55 = vpop.permute.xlu1 %1381 }
 0x461   : > { %v1500_v57 = vpop.permute.xlu1 %1499 }
 0x465   : > { %v1618_v60 = vpop.permute.xlu1 %1617 }
 0x466   : > { %v1623_v61 = vsel %vm1272_vm1, %v1618_v60, 0 }
 0x469   : > { %v1616_v3 = vpop.permute.xlu1 %1615 }
 0x4af   : > { %v1313_v36 = vpop.f32.mrf.mxu1 }
 0x4b0   : > { %v1320_v37 = vsel %vm1319_vm2, %v1313_v36, -inf }
 0x4b1   : > { %1321 = vmax.xlane.f32.xlu0 %v1320_v37  ;;  %v2220_v38 = vpop.f32.mrf.mxu1 }
 0x4b3   : > { %v1316_v39 = vpop.f32.mrf.mxu1 }
 0x4b5   : > { %v2221_v40 = vpop.f32.mrf.mxu1 }
 0x4db   : > { %v1265_v42 = vpop.f32.mrf.mxu0 }
 0x4dc   : > { %v1266_v43 = vadd.f32 %v1918_v41, %v1265_v42 }
 0x4dd   : > { %v2214_v44 = vpop.f32.mrf.mxu0 }
 0x4de   : > { %v2886_v46 = vpack.c.bf16 %v1266_v43, %v1266_v43 }
 0x4df   : > { %v1268_v45 = vpop.f32.mrf.mxu0 }
 0x4e0   : > { %v1337_v48 = vsel %vm1335_vm3, %v2886_v46, 0 }
 0x4e1   : > { %v2215_v47 = vpop.f32.mrf.mxu0  ;;  %2223 = vmatpush3.bf16.msra.mxu1 %v1337_v48 }
 0x4e2   : > { %2228 = vmatprep.subr.bf16.mxu1 %v2597_v0 }
 0x53a   : > { %v1322_v49 = vpop.xlane.xlu0 %1321 }
 0x53b   : > { %v1323_v50 = vsub.f32 %v1313_v36, %v1322_v49 }
 0x53d   : > { %v1324_v51 = vmul.f32 1.442695, %v1323_v50 }
 0x53f   : > { %2424 = vpow2.f32 %v1324_v51 }
 0x54c   : > { %v2425_v52 = vpop.eup %2424 }
 0x54d   : > { %v1326_v53 = vsel %vm1319_vm2, %v2425_v52, 0.0 }
 0x54e   : > { %1327 = vadd.xlane.f32.xlu0 %v1326_v53 }
 0x564   : > { %1501 = vrot.lane.b32.xlu0 %v2860_v11, %s2600_s20 }
 0x5d7   : > { %v1328_v56 = vpop.xlane.xlu0 %1327 }
 0x5d8   : > { %2426 = vrcp.f32 %v1328_v56 }
 0x5db   : > { %v1502_v58 = vpop.permute.xlu0 %1501 }
 0x5dc   : > { %v1507_v59 = vsel %vm1272_vm1, %v1502_v58, 0 }
 0x5dd   : > { %2241 = vmatpush3.bf16.xpose.msra.mxu0 %v1507_v59 }
 0x5de   : > { %2252 = vmatprep.subr.bf16.mxu0 %v2597_v0 }
 0x5e4   : > { %2243 = vmatmul.mubr.msk.bf16.vlgmr.msra.gmra.mxu0 %vm1272_vm1, %v1500_v57 }
 0x5e5   : > { %v2427_v62 = vpop.eup %2426  ;;  %2253 = vmatpush3.bf16.xpose.msra.mxu0 %v1623_v61  ;;  %2254 = vmatprep.mubr.msk.bf16.mxu0 %vm2598_vm0, %v2597_v0 }
 0x5e6   : > { %v1330_v63 = vmul.f32 %v2427_v62, %v2425_v52 }
 0x5e8   : > { %v1331_v1 = vpack.c.bf16 %v1330_v63, %v1330_v63 }
 0x5ea   : > { %2225 = vmatmul.mubr.msk.bf16.vlgmr.msra.gmra.mxu1 %vm1319_vm2, %v1331_v1 }
 0x5eb   : > { %2229 = vmatpush3.bf16.xpose.msra.mxu1 %v1390_v2  ;;  %2230 = vmatprep.mubr.msk.bf16.mxu1 %vm2598_vm0, %v2597_v0 }
 0x5ec   : > { %2255 = vmatmul.mubr.msk.bf16.vlgmr.msra.gmra.mxu0 %vm1272_vm1, %v1616_v3  ;;  %2234 = vmatprep.subr.bf16.mxu1 %v2597_v0 }
 0x5f2   : > { %2231 = vmatmul.mubr.msk.bf16.vlgmr.msra.gmra.mxu1 %vm1272_vm1, %v1382_v55 }
 0x5f3   : > { %2236 = vmatprep.mubr.msk.bf16.mxu1 %vm2598_vm0, %v2597_v0 }
 0x6a4   : > { %v1543_v4 = vpop.f32.mrf.mxu0 }
 0x6a5   : > { %v1549_v5 = vsel %vm1319_vm2, %v1543_v4, -inf }
 0x6a6   : > { %1550 = vmax.xlane.f32.xlu0 %v1549_v5  ;;  %v2244_v6 = vpop.f32.mrf.mxu0 }
 0x6a8   : > { %v1546_v7 = vpop.f32.mrf.mxu0 }
 0x6aa   : > { %v1373_v8 = vpop.f32.mrf.mxu1  ;;  %v2245_v9 = vpop.f32.mrf.mxu0 }
 0x6ab   : > { %1379 = vst.msk [vmem:[%s2912_s30] sm:$0xff] %vm1272_vm1, %v1373_v8 }
 0x6ac   : > { %v2226_v10 = vpop.f32.mrf.mxu1  ;;  %v1659_v11 = vpop.f32.mrf.mxu0 }
 0x6ad   : > { %v1665_v22 = vsel %vm1319_vm2, %v1659_v11, -inf }
 0x6ae   : > { %v1376_v13 = vpop.f32.mrf.mxu1  ;;  %v2256_v14 = vpop.f32.mrf.mxu0 }
 0x6b0   : > { %v2227_v15 = vpop.f32.mrf.mxu1  ;;  %v1662_v16 = vpop.f32.mrf.mxu0 }
 0x6b2   : > { %v1426_v17 = vpop.f32.mrf.mxu1  ;;  %v2257_v18 = vpop.f32.mrf.mxu0 }
 0x6b3   : > { %v1432_v19 = vsel %vm1319_vm2, %v1426_v17, -inf }
 0x6b4   : > { %1433 = vmax.xlane.f32.xlu1 %v1432_v19  ;;  %v2232_v20 = vpop.f32.mrf.mxu1 }
 0x6b6   : > { %v1429_v21 = vpop.f32.mrf.mxu1 }
 0x6b8   : > { %v2233_v23 = vpop.f32.mrf.mxu1  ;;  %1666 = vmax.xlane.f32.xlu1 %v1665_v22 }
 0x72f   : > { %v1551_v24 = vpop.xlane.xlu0 %1550 }
 0x730   : > { %v1552_v25 = vsub.f32 %v1543_v4, %v1551_v24 }
 0x732   : > { %v1553_v26 = vmul.f32 1.442695, %v1552_v25 }
 0x734   : > { %2428 = vpow2.f32 %v1553_v26 }
 0x73d   : > { %v1434_v27 = vpop.xlane.xlu1 %1433 }
 0x73e   : > { %v1435_v28 = vsub.f32 %v1426_v17, %v1434_v27 }
 0x740   : > { %v1436_v32 = vmul.f32 1.442695, %v1435_v28 }
 0x741   : > { %v2429_v12 = vpop.eup %2428  ;;  %v1667_v29 = vpop.xlane.xlu1 %1666 }
 0x742   : > { %v1668_v30 = vsub.f32 %v1659_v11, %v1667_v29  ;;  %v1555_v31 = vsel %vm1319_vm2, %v2429_v12, 0.0 }
 0x743   : > { %1556 = vadd.xlane.f32.xlu0 %v1555_v31 }
 0x744   : > { %v1669_v33 = vmul.f32 1.442695, %v1668_v30 }
 0x746   : > { %2430 = vpow2.f32 %v1669_v33 }
 0x747   : > { %2432 = vpow2.f32 %v1436_v32 }
 0x753   : > { %v2431_v34 = vpop.eup %2430 }
 0x754   : > { %v1671_v35 = vsel %vm1319_vm2, %v2431_v34, 0.0  ;;  %v2433_v36 = vpop.eup %2432 }
 0x755   : > { %1672 = vadd.xlane.f32.xlu1 %v1671_v35  ;;  %v1438_v37 = vsel %vm1319_vm2, %v2433_v36, 0.0 }
 0x759   : > { %1445 = vrot.lane.b32.xlu0 %v2886_v46, %s2599_s18  ;;  %1439 = vadd.xlane.f32.xlu1 %v1438_v37 }
 0x76a   : > { %1561 = vrot.lane.b32.xlu1 %v2886_v46, %s2600_s20 }
 0x76e   : > { %1677 = vrot.lane.b32.xlu1 %v2886_v46, %s2601_s28 }
 0x7cc   : > { %v1557_v38 = vpop.xlane.xlu0 %1556 }
 0x7d0   : > { %v1446_v39 = vpop.permute.xlu0 %1445 }
 0x7d1   : > { %v1451_v40 = vsel %vm1335_vm3, %v1446_v39, 0 }
 0x7d2   : > { %2235 = vmatpush3.bf16.msra.mxu1 %v1451_v40 }
 0x7d3   : > { %2246 = vmatprep.subr.bf16.mxu1 %v2597_v0 }
 0x7de   : > { %v1673_v41 = vpop.xlane.xlu1 %1672 }
 0x7e2   : > { %v1440_v42 = vpop.xlane.xlu1 %1439 }
 0x7e3   : > { %2434 = vrcp.f32 %v1440_v42 }
 0x7e4   : > { %2436 = vrcp.f32 %v1557_v38 }
 0x7e5   : > { %2438 = vrcp.f32 %v1673_v41 }
 0x7e6   : > { %v1562_v45 = vpop.permute.xlu1 %1561 }
 0x7e7   : > { %v1567_v49 = vsel %vm1335_vm3, %v1562_v45, 0 }
 0x7ea   : > { %v1678_v50 = vpop.permute.xlu1 %1677 }
 0x7eb   : > { %v1683_v53 = vsel %vm1335_vm3, %v1678_v50, 0 }
 0x7f0   : > { %v2435_v43 = vpop.eup %2434 }
 0x7f1   : > { %v1442_v44 = vmul.f32 %v2435_v43, %v2433_v36  ;;  %v2437_v48 = vpop.eup %2436 }
 0x7f2   : > { %v1559_v46 = vmul.f32 %v2437_v48, %v2429_v12  ;;  %v2439_v52 = vpop.eup %2438 }
 0x7f3   : > { %v1443_v47 = vpack.c.bf16 %v1442_v44, %v1442_v44  ;;  %v1675_v54 = vmul.f32 %v2439_v52, %v2431_v34 }
 0x7f4   : > { %v1560_v51 = vpack.c.bf16 %v1559_v46, %v1559_v46 }
 0x7f5   : > { %2237 = vmatmul.mubr.msk.bf16.vlgmr.msra.gmra.mxu1 %vm1319_vm2, %v1443_v47  ;;  %v1676_v55 = vpack.c.bf16 %v1675_v54, %v1675_v54 }
 0x7f6   : > { %2247 = vmatpush3.bf16.msra.mxu1 %v1567_v49  ;;  %2248 = vmatprep.mubr.msk.bf16.mxu1 %vm2598_vm0, %v2597_v0 }
 0x7f7   : > { %2258 = vmatprep.subr.bf16.mxu1 %v2597_v0 }
 0x7fd   : > { %2249 = vmatmul.mubr.msk.bf16.vlgmr.msra.gmra.mxu1 %vm1319_vm2, %v1560_v51 }
 0x7fe   : > { %2259 = vmatpush3.bf16.msra.mxu1 %v1683_v53  ;;  %2260 = vmatprep.mubr.msk.bf16.mxu1 %vm2598_vm0, %v2597_v0 }
 0x805   : > { %2261 = vmatmul.mubr.msk.bf16.vlgmr.msra.gmra.mxu1 %vm1319_vm2, %v1676_v55 }
 0x8b5   : > { %v1487_v56 = vpop.f32.mrf.mxu1 }
 0x8b6   : > { %1494 = vrot.lane.b32.xlu0 %v1487_v56, %s2601_s28 }
 0x8b7   : > { %v2238_v57 = vpop.f32.mrf.mxu1 }
 0x8b9   : > { %v1490_v58 = vpop.f32.mrf.mxu1 }
 0x8bb   : > { %v2239_v59 = vpop.f32.mrf.mxu1 }
 0x8bd   : > { %v1603_v60 = vpop.f32.mrf.mxu1 }
 0x8be   : > { %1610 = vrot.lane.b32.xlu1 %v1603_v60, %s2600_s20 }
 0x8bf   : > { %v2250_v61 = vpop.f32.mrf.mxu1 }
 0x8c1   : > { %v1606_v62 = vpop.f32.mrf.mxu1 }
 0x8c3   : > { %v2251_v0 = vpop.f32.mrf.mxu1 }
 0x8c5   : > { %v1719_v63 = vpop.f32.mrf.mxu1 }
 0x8c6   : > { %1726 = vrot.lane.b32.xlu0 %v1719_v63, %s2599_s18 }
 0x8c7   : > { %v2262_v1 = vpop.f32.mrf.mxu1 }
 0x8c9   : > { %v1722_v2 = vpop.f32.mrf.mxu1 }
 0x8cb   : > { %v2263_v3 = vpop.f32.mrf.mxu1 }
 0x928   : > { %v1495_v4 = vpop.permute.xlu0 %1494 }
 0x929   : > { %1498 = vst.msk [vmem:[%s2912_s30] sm:$0xff] %vm1497_vm4, %v1495_v4 }
 0x930   : > { %v1611_v5 = vpop.permute.xlu1 %1610 }
 0x931   : > { %1614 = vst.msk [vmem:[%s2912_s30] sm:$0xff] %vm1613_vm5, %v1611_v5 }
 0x938   : > { %v1727_v6 = vpop.permute.xlu0 %1726 }
 0x939   : > { %1730 = vst.msk [vmem:[%s2912_s30] sm:$0xff] %vm1729_vm6, %v1727_v6 }
 0x93a   : > { %2533 = shalt.err (!%p2530_p5)
}
 0x93b   : > { %s2534_s26 = scalar_lea.hbm %s2949_s11, 128  ;;  %s2538_s6 = scalar_lea.hbm %s2990_s3, 256 }
 0x93c   : > { %p2535_p2 = scmp.ne.s32.totalorder %s2949_s11, %s2534_s26  ;;  %p2539_p1 = scmp.lt.s32.totalorder %s2949_s11, %s2990_s3 }
 0x93d   : > { %p2540_p4 = scmp.lt.s32.totalorder %s2538_s6, %s2534_s26 }
 0x93e   : > { %p2536_p9 = pnand %p2535_p2, %p3005_p10 }
 0x93f   : > { %p2541_p6 = por %p2540_p4, %p2539_p1 }
 0x940   : > { %p2537_p12 = pneg %p2536_p9 }
 0x942   : > { %p2542_p8 = pnand %p2541_p6, %p2537_p12 }
 0x944   : > { %2545 = shalt.err (!%p2542_p8)
}
 0x945   : > { %2274 = dma.vmem_to_hbm [thread:$0]  (%p3005_p10), %s1746_s5, 128, %s2949_s11, %s1732_s17  }
 0x946 PF: > { %s1757_s20 = sand.u32 1, %s2576_s12   ;;  %p3006_p11 = scmp.ne.s32.totalorder %s2996_s19, 0 }
 0x947   : > { %p3007_p7 = scmp.ge.s32.totalorder %s2588_s15, 2  ;;  %s1758_s28 = scalar_lea.sflag [#allocation4], %s1757_s20 }
 0x949   : > { %p2288_p13 = pnand %p3007_p7, %p3006_p11 }
 0x94b   : > { %p2289_p0 = pneg %p2288_p13 }
 0x94d   : > { %2571 = dma.done.wait (%p2289_p0), %s1758_s28, 128  }
 0x94e   : > { %2573 = vsyncadd (%p2289_p0), %s1758_s28, 4294967168  ;;  %p17_p3 = scmp.ge.s32.totalorder %s2703_s10, 4   ;;  %s3008_s12 = smov %s2580_s13 }
 0x94f   : > { %s3009_s13 = smov %s2584_s14  ;;  %s3010_s14 = smov %s2712_s21 }
 0x950   : > { %s3011_s15 = smov %s2703_s10  ;;  %19 = sbr.rel (!%p17_p3) target bundleno = 6 (0x6), region = 101 }
 0x955   :  { %1763 = vsyncpa [#allocation3], 1 }
 0x956   :  { %1765 = vsyncpa [#allocation3 + $0x1], 1 }
 0x957   :  { %1766 = vsyncpa [#allocation6], 1 }
 0x958   :  { %1767 = vsyncpa [#allocation4], 1 }
 0x959   :  { %1769 = vsyncpa [#allocation4 + $0x1], 1 }

</bundles_post_ra>
